<compile_context>
chip_gen: v7x
topology: tpu7x:2x2x1
jax: 0.10.0
libtpu: 0.0.40
codegen_flags: <defaults>
</compile_context>

<pallas_src>
import functools

import jax
import jax.numpy as jnp
from jax import lax
from jax.experimental import pallas as pl
from jax.experimental.pallas import tpu as pltpu


# ----------------------------------------------------------------------------
# Glue: sampling & grouping (plain JAX, mirrors the PyTorch helpers)
# ----------------------------------------------------------------------------

def square_distance(src, dst):
    # src [B,N,C], dst [B,M,C] -> [B,N,M]
    dist = -2.0 * jnp.einsum("bnc,bmc->bnm", src, dst)
    dist = dist + jnp.sum(src ** 2, -1)[..., :, None]
    dist = dist + jnp.sum(dst ** 2, -1)[..., None, :]
    return dist


def index_points(points, idx):
    # points [B,N,C], idx [B,...] -> [B,...,C]
    B = points.shape[0]
    batch = jnp.arange(B).reshape((B,) + (1,) * (idx.ndim - 1))
    return points[batch, idx]


def farthest_point_sample(xyz, npoint):
    # xyz [B,N,3] -> [B,npoint] int32 indices
    B, N, _ = xyz.shape
    centroids0 = jnp.zeros((B, npoint), dtype=jnp.int32)
    distance0 = jnp.full((B, N), 1e10, dtype=xyz.dtype)
    farthest0 = jnp.zeros((B,), dtype=jnp.int32)  # deterministic (torch uses randint)
    batch_idx = jnp.arange(B)

    def body(i, carry):
        centroids, distance, farthest = carry
        centroids = centroids.at[:, i].set(farthest)
        centroid = xyz[batch_idx, farthest][:, None, :]           # [B,1,3]
        dist = jnp.sum((xyz - centroid) ** 2, -1)                 # [B,N]
        distance = jnp.minimum(distance, dist)
        farthest = jnp.argmax(distance, -1).astype(jnp.int32)
        return centroids, distance, farthest

    centroids, _, _ = lax.fori_loop(0, npoint, body,
                                    (centroids0, distance0, farthest0))
    return centroids


def query_ball_point(radius, nsample, xyz, new_xyz):
    B, N, _ = xyz.shape
    S = new_xyz.shape[1]
    group_idx = jnp.broadcast_to(jnp.arange(N, dtype=jnp.int32), (B, S, N))
    sqrdists = square_distance(new_xyz, xyz)
    group_idx = jnp.where(sqrdists > radius ** 2, N, group_idx)
    group_idx = jnp.sort(group_idx, axis=-1)[:, :, :nsample]
    group_first = jnp.broadcast_to(group_idx[:, :, :1], group_idx.shape)
    group_idx = jnp.where(group_idx == N, group_first, group_idx)
    return group_idx


def sample_and_group(npoint, radius, nsample, xyz, points):
    # xyz [B,N,3], points [B,N,D] -> new_xyz [B,S,3], new_points [B,S,K,3+D]
    B, N, C = xyz.shape
    fps_idx = farthest_point_sample(xyz, npoint)
    new_xyz = index_points(xyz, fps_idx)
    idx = query_ball_point(radius, nsample, xyz, new_xyz)
    grouped_xyz = index_points(xyz, idx)
    grouped_xyz_norm = grouped_xyz - new_xyz[:, :, None, :]
    if points is not None:
        grouped_points = index_points(points, idx)
        new_points = jnp.concatenate([grouped_xyz_norm, grouped_points], axis=-1)
    else:
        new_points = grouped_xyz_norm
    return new_xyz, new_points


def sample_and_group_all(xyz, points):
    B, N, C = xyz.shape
    new_xyz = jnp.zeros((B, 1, C), dtype=xyz.dtype)
    grouped_xyz = xyz[:, None, :, :]
    if points is not None:
        new_points = jnp.concatenate([grouped_xyz, points[:, None, :, :]], axis=-1)
    else:
        new_points = grouped_xyz
    return new_xyz, new_points


# ----------------------------------------------------------------------------
# VMEM budgeting (generation-aware)
# ----------------------------------------------------------------------------

def _round_up(x, m):
    return ((x + m - 1) // m) * m


def _vmem_limit_bytes():
    """~75% of physical per-core VMEM; falls back to 64 MiB (v7x per-TC) if the query
    fails.  Used both as the compiler vmem limit and (scaled) as the tile budget."""
    cap = 64 * 1024 * 1024
    try:
        cap = int(pltpu.get_tpu_info().vmem_capacity_bytes)
    except Exception:
        pass
    return max(32 * 1024 * 1024, int(cap * 0.75))


def _choose_s_tile(S, K, cin, couts, budget_bytes):
    """Largest lane-dense S tile whose per-step VMEM working set fits the budget,
    accounting for layout padding (bf16 packs 16 sublanes, f32 packs 8, lanes round
    to 128) and double buffering.  Returns (tS, S_padded)."""
    c_last = couts[-1]
    c_max = max(couts)
    cin_sub = _round_up(max(cin, 1), 16)            # bf16 input, Cin on sublanes
    c_last_sub = _round_up(c_last, 8)               # f32 output, c_last on sublanes
    c_max_sub = _round_up(c_max, 8)
    per_row = (
        2 * K * cin_sub * 2                          # double-buffered bf16 input block
        + 2 * c_last_sub * 4                         # double-buffered f32 output block
        + 3 * c_max_sub * 4                          # live / spilled per-k activations
    )
    # Grid-invariant weights & shifts (double-buffered by the default pipeline).
    fixed = 0
    last = cin
    for cout in couts:
        fixed += 2 * (_round_up(cout, 8) * _round_up(last, 128) * 2   # bf16 weight
                      + _round_up(cout, 8) * 128 * 4)                 # f32 shift [cout,1]
        last = cout
    avail = max(budget_bytes - fixed, per_row)
    max_rows = max(1, avail // per_row)
    if S <= max_rows:
        return S, S                                  # single full-S tile per batch
    tS = max(128, (max_rows // 128) * 128)
    tS = min(tS, 2048)                               # bound per-step vreg/spill pressure
    s_pad = _round_up(S, tS)
    return tS, s_pad


# ----------------------------------------------------------------------------
# Pallas kernels
# ----------------------------------------------------------------------------

def _mlp_max_kernel(num_layers, x_ref, *refs):
    """x_ref: [K, Cin, tS] bf16 (channels-first; S on lanes, one slab per group member).
    Per-layer refs: W [Cout, Cin] bf16 (BN scale folded in), shift [Cout, 1] f32.
    out_ref: [c_last, tS] f32, used directly as the running-max accumulator so the K
    pool is fused, stores are lane-dense over S, and there is no transpose epilogue."""
    out_ref = refs[-1]
    params = refs[:-1]
    K = x_ref.shape[0]

    out_ref[...] = jnp.full(out_ref.shape, -jnp.inf, out_ref.dtype)

    @pl.loop(0, K, unroll=K <= 16)
    def _(k):
        h = x_ref[k]                                            # [Cin, tS] bf16
        for l in range(num_layers):
            w = params[2 * l][...]                              # [Cout, Cin] bf16
            shift = params[2 * l + 1][...]                      # [Cout, 1]  f32
            acc = jnp.dot(w, h, preferred_element_type=jnp.float32)   # MXU, f32 acc
            acc = jnp.maximum(acc + shift, 0.0)                 # folded bias/BN + ReLU (VPU)
            h = acc.astype(jnp.bfloat16) if l + 1 < num_layers else acc
        out_ref[...] = jnp.maximum(out_ref[...], h)             # fused max over K (VPU)


def _mlp_max_all_kernel(num_layers, x_ref, *refs):
    """group_all path: x_ref [Cin, N] bf16 (all N points on lanes); out_ref [c_last, 1]."""
    out_ref = refs[-1]
    params = refs[:-1]
    h = x_ref[...]
    for l in range(num_layers):
        w = params[2 * l][...]
        shift = params[2 * l + 1][...]
        acc = jnp.dot(w, h, preferred_element_type=jnp.float32)
        acc = jnp.maximum(acc + shift, 0.0)
        h = acc.astype(jnp.bfloat16) if l + 1 < num_layers else acc
    out_ref[...] = jnp.max(h, axis=-1, keepdims=True)           # lane max over all points


# ----------------------------------------------------------------------------
# pallas_call wrappers
# ----------------------------------------------------------------------------

def pointnet_sa_mlp(new_points, layer_params):
    """new_points: [B, S, K, Cin] (gather output). Returns [B, c_last, S] float32."""
    B, S, K, Cin = new_points.shape
    couts = [w.shape[0] for (w, _) in layer_params]
    c_last = couts[-1]
    vmem_limit = _vmem_limit_bytes()
    tS, s_pad = _choose_s_tile(S, K, Cin, couts, int(vmem_limit * 0.7))

    # Channels-first kernel layout [B, K, Cin, S]: S on lanes, per-k slabs on the leading
    # axis so the kernel never reshapes / relayouts.  Pad S to the tile if needed.
    x = jnp.transpose(new_points, (0, 2, 3, 1)).astype(jnp.bfloat16)
    if s_pad != S:
        x = jnp.pad(x, ((0, 0), (0, 0), (0, 0), (0, s_pad - S)))

    in_specs = [pl.BlockSpec((None, K, Cin, tS), lambda s, b: (b, 0, 0, s))]
    flat_params = []
    # TODO(synk): grid-invariant weights/shifts could be single-buffered via
    #             pipeline_mode=pl.Buffered(1) to shave VMEM on deep MLPs; kept at the
    #             default double-buffering for maximum compatibility.
    for (w, shift) in layer_params:
        cout, cin = w.shape
        in_specs.append(pl.BlockSpec((cout, cin), lambda s, b: (0, 0)))
        in_specs.append(pl.BlockSpec((cout, 1), lambda s, b: (0, 0)))
        flat_params += [w, shift]

    out_specs = pl.BlockSpec((None, c_last, tS), lambda s, b: (b, 0, s))
    kernel = functools.partial(_mlp_max_kernel, len(layer_params))

    out = pl.pallas_call(
        kernel,
        out_shape=jax.ShapeDtypeStruct((B, c_last, s_pad), jnp.float32),
        grid_spec=pltpu.PrefetchScalarGridSpec(
            num_scalar_prefetch=0,
            grid=(s_pad // tS, B),          # S-tile axis leads -> balanced megacore on v7x
            in_specs=in_specs,
            out_specs=out_specs,
        ),
        compiler_params=pltpu.CompilerParams(
            dimension_semantics=("parallel", "parallel"),
            vmem_limit_bytes=vmem_limit,
        ),
    )(x, *flat_params)

    return out[:, :, :S] if s_pad != S else out


def pointnet_sa_mlp_group_all(new_points, layer_params):
    """new_points: [B, 1, N, Cin]. Returns [B, c_last, 1] float32."""
    B, _, N, Cin = new_points.shape
    c_last = layer_params[-1][0].shape[0]
    x = jnp.transpose(new_points[:, 0], (0, 2, 1)).astype(jnp.bfloat16)   # [B, Cin, N]

    in_specs = [pl.BlockSpec((None, Cin, N), lambda b: (b, 0, 0))]
    flat_params = []
    for (w, shift) in layer_params:
        cout, cin = w.shape
        in_specs.append(pl.BlockSpec((cout, cin), lambda b: (0, 0)))
        in_specs.append(pl.BlockSpec((cout, 1), lambda b: (0, 0)))
        flat_params += [w, shift]

    out_specs = pl.BlockSpec((None, c_last, 1), lambda b: (b, 0, 0))
    kernel = functools.partial(_mlp_max_all_kernel, len(layer_params))

    # TODO(synk): for very large N, tile N with a running max instead of one block.
    return pl.pallas_call(
        kernel,
        out_shape=jax.ShapeDtypeStruct((B, c_last, 1), jnp.float32),
        grid_spec=pltpu.PrefetchScalarGridSpec(
            num_scalar_prefetch=0,
            grid=(B,),
            in_specs=in_specs,
            out_specs=out_specs,
        ),
        compiler_params=pltpu.CompilerParams(
            dimension_semantics=("parallel",),
            vmem_limit_bytes=_vmem_limit_bytes(),
        ),
    )(x, *flat_params)


# ----------------------------------------------------------------------------
# Module wrapper (parameter setup + forward orchestration)
# ----------------------------------------------------------------------------

class PointNetSetAbstractionPallas:
    def __init__(self, npoint, radius, nsample, in_channel, mlp, group_all,
                 sampling, key):
        self.npoint = npoint
        self.radius = radius
        self.nsample = nsample
        self.group_all = group_all
        self.sampling = sampling
        eps = 1e-5

        self.layer_params = []
        last_channel = in_channel
        for out_channel in mlp:
            key, k_w, k_b, k_g, k_be = jax.random.split(key, 5)
            # Conv2d(last, out, kernel=1) weight [out, in, 1, 1] -> [Cout, Cin]
            w = (jax.random.normal(k_w, (out_channel, last_channel), jnp.float32)
                 * (1.0 / jnp.sqrt(last_channel)))
            bias = jax.random.normal(k_b, (out_channel, 1), jnp.float32) * 0.1
            # BatchNorm2d (eval mode): fold running stats + affine into scale/shift
            gamma = 1.0 + 0.1 * jax.random.normal(k_g, (out_channel, 1), jnp.float32)
            beta = 0.1 * jax.random.normal(k_be, (out_channel, 1), jnp.float32)
            running_mean = jnp.zeros((out_channel, 1), jnp.float32)
            running_var = jnp.ones((out_channel, 1), jnp.float32)
            scale = gamma / jnp.sqrt(running_var + eps)
            shift = beta - running_mean * scale
            # Fold conv bias + BN affine into the matmul:
            #   (W h + b) * scale + shift == (W * scale) h + (b * scale + shift)
            w_folded = (w * scale).astype(jnp.bfloat16)           # bf16 MXU weights
            shift_folded = (bias * scale + shift).astype(jnp.float32)
            self.layer_params.append((w_folded, shift_folded))
            last_channel = out_channel

    def __call__(self, xyz, points):
        """xyz: [B, 3, N]; points: [B, D, N] or None.
        Returns new_xyz [B, 3, S], new_points [B, mlp[-1], S]."""
        xyz_t = jnp.transpose(xyz, (0, 2, 1))                     # [B,N,3]
        points_t = (jnp.transpose(points, (0, 2, 1))
                    if points is not None else None)              # [B,N,D]

        if self.group_all:
            new_xyz, new_points = sample_and_group_all(xyz_t, points_t)
            feats = pointnet_sa_mlp_group_all(new_points, self.layer_params)
        else:
            # TODO(synk): 'entropy' sampling branch not implemented (dynamic-length loop)
            new_xyz, new_points = sample_and_group(
                self.npoint, self.radius, self.nsample, xyz_t, points_t)
            feats = pointnet_sa_mlp(new_points, self.layer_params)

        new_xyz = jnp.transpose(new_xyz, (0, 2, 1))               # [B, 3, S]
        return new_xyz, feats


# ----------------------------------------------------------------------------
# Pure-JAX reference of the hot path (for a sanity check against the kernel)
# ----------------------------------------------------------------------------

def _mlp_max_reference(new_points, layer_params):
    # new_points [B,S,K,Cin] f32, folded params -> [B, c_last, S] f32
    h = new_points.astype(jnp.float32)
    for (w, shift) in layer_params:
        h = jnp.einsum("oc,bskc->bsko", w.astype(jnp.float32), h) + shift[:, 0]
        h = jnp.maximum(h, 0.0)
    return jnp.transpose(jnp.max(h, axis=2), (0, 2, 1))


# ----------------------------------------------------------------------------

if __name__ == "__main__":
    key = jax.random.PRNGKey(0)
    k_xyz, k_pts, k_par, k_par2 = jax.random.split(key, 4)

    B, N, D = 2, 32, 4
    npoint, radius, nsample = 16, 0.4, 8
    mlp = [16, 32]
    in_channel = 3 + D  # grouped xyz (3) concat point features (D)

    xyz = jax.random.uniform(k_xyz, (B, 3, N), jnp.float32)       # [B, 3, N]
    points = jax.random.normal(k_pts, (B, D, N), jnp.float32)     # [B, D, N]

    # FPS / ball-query path
    module = PointNetSetAbstractionPallas(
        npoint=npoint, radius=radius, nsample=nsample,
        in_channel=in_channel, mlp=mlp, group_all=False,
        sampling="FPS", key=k_par)
    new_xyz, new_feats = module(xyz, points)
    jax.block_until_ready((new_xyz, new_feats))
    assert new_xyz.shape == (B, 3, npoint), new_xyz.shape
    assert new_feats.shape == (B, mlp[-1], npoint), new_feats.shape

    # Numeric sanity check vs pure-JAX reference (loose tolerance: kernel uses bf16
    # activations/weights with f32 accumulation).
    xyz_t = jnp.transpose(xyz, (0, 2, 1))
    pts_t = jnp.transpose(points, (0, 2, 1))
    _, grouped = sample_and_group(npoint, radius, nsample, xyz_t, pts_t)
    ref = _mlp_max_reference(grouped, module.layer_params)
    got = pointnet_sa_mlp(grouped, module.layer_params)
    jax.block_until_ready((ref, got))
    max_err = float(jnp.max(jnp.abs(got - ref)))
    assert jnp.allclose(got, ref, rtol=1e-1, atol=1e-1), max_err

    # group_all path
    module_all = PointNetSetAbstractionPallas(
        npoint=None, radius=None, nsample=None,
        in_channel=in_channel, mlp=mlp, group_all=True,
        sampling="FPS", key=k_par2)
    ga_xyz, ga_feats = module_all(xyz, points)
    jax.block_until_ready((ga_xyz, ga_feats))
    assert ga_xyz.shape == (B, 3, 1), ga_xyz.shape
    assert ga_feats.shape == (B, mlp[-1], 1), ga_feats.shape

    print("KERNEL_OK")
</pallas_src>

<mosaic_0001>
module attributes {stable_mosaic.version = 11 : i64} {
  func.func @_mlp_max_kernel(%arg0: i32, %arg1: i32, %arg2: memref<1x8x7x16xbf16, #tpu.memory_space<vmem>>, %arg3: memref<16x7xbf16, #tpu.memory_space<vmem>>, %arg4: memref<16x1xf32, #tpu.memory_space<vmem>>, %arg5: memref<32x16xbf16, #tpu.memory_space<vmem>>, %arg6: memref<32x1xf32, #tpu.memory_space<vmem>>, %arg7: memref<1x32x16xf32, #tpu.memory_space<vmem>>) attributes {dimension_semantics = [#tpu.dimension_semantics<parallel>, #tpu.dimension_semantics<parallel>], iteration_bounds = array<i64: 1, 2>, scalar_prefetch = 0 : i64, scratch_operands = 0 : i64, tpu.core_type = #tpu.core_type<tc>, window_params = [{transform_indices = @transform_0, window_bounds = array<i64: 1, 8, 7, 16>}, {pipeline_mode = #tpu.pipeline_mode<synchronous>, transform_indices = @transform_1, window_bounds = array<i64: 16, 7>}, {pipeline_mode = #tpu.pipeline_mode<synchronous>, transform_indices = @transform_2, window_bounds = array<i64: 16, 1>}, {pipeline_mode = #tpu.pipeline_mode<synchronous>, transform_indices = @transform_3, window_bounds = array<i64: 32, 16>}, {pipeline_mode = #tpu.pipeline_mode<synchronous>, transform_indices = @transform_4, window_bounds = array<i64: 32, 1>}, {transform_indices = @transform_5, window_bounds = array<i64: 1, 32, 16>}]} {
    %cst = arith.constant 0xFF800000 : f32
    %0 = vector.broadcast %cst : f32 to vector<32x16xf32>
    %c0 = arith.constant 0 : index
    %c0_0 = arith.constant 0 : index
    %c0_1 = arith.constant 0 : index
    %1 = vector.load %arg7[%c0, %c0_0, %c0_1] : memref<1x32x16xf32, #tpu.memory_space<vmem>>, vector<1x32x16xf32>
    %2 = vector.shape_cast %1 : vector<1x32x16xf32> to vector<32x16xf32>
    %3 = vector.shape_cast %0 : vector<32x16xf32> to vector<1x32x16xf32>
    tpu.vector_store %arg7[%c0, %c0_0, %c0_1], %3 {strides = array<i32>} : memref<1x32x16xf32, #tpu.memory_space<vmem>>, vector<1x32x16xf32>,
    %c0_i32 = arith.constant 0 : i32
    %c1_i32 = arith.constant 1 : i32
    %4 = arith.muli %c0_i32, %c1_i32 : i32
    %c0_i32_2 = arith.constant 0 : i32
    %5 = arith.addi %c0_i32_2, %4 : i32
    %c0_3 = arith.constant 0 : index
    %6 = arith.index_cast %5 : i32 to index
    %c0_4 = arith.constant 0 : index
    %c0_5 = arith.constant 0 : index
    %7 = vector.load %arg2[%c0_3, %6, %c0_4, %c0_5] : memref<1x8x7x16xbf16, #tpu.memory_space<vmem>>, vector<1x1x7x16xbf16>
    %8 = vector.shape_cast %7 : vector<1x1x7x16xbf16> to vector<7x16xbf16>
    %c0_6 = arith.constant 0 : index
    %c0_7 = arith.constant 0 : index
    %9 = vector.load %arg3[%c0_6, %c0_7] : memref<16x7xbf16, #tpu.memory_space<vmem>>, vector<16x7xbf16>
    %c0_8 = arith.constant 0 : index
    %c0_9 = arith.constant 0 : index
    %10 = vector.load %arg4[%c0_8, %c0_9] : memref<16x1xf32, #tpu.memory_space<vmem>>, vector<16x1xf32>
    %cst_10 = arith.constant dense<0.000000e+00> : vector<16x16xf32>
    %11 = tpu.matmul %9, %8, %cst_10 {dimension_numbers = #tpu.dot_dimension_numbers<[1], [0], [0], [1], [0, 0, 1, 1], [], []>} : vector<16x7xbf16>, vector<7x16xbf16>, vector<16x16xf32> -> vector<16x16xf32>
    %12 = vector.broadcast %10 : vector<16x1xf32> to vector<16x16xf32>
    %13 = arith.addf %11, %12 : vector<16x16xf32>
    %cst_11 = arith.constant 0.000000e+00 : f32
    %14 = vector.broadcast %cst_11 : f32 to vector<16x16xf32>
    %15 = arith.maximumf %13, %14 : vector<16x16xf32>
    %16 = arith.truncf %15 : vector<16x16xf32> to vector<16x16xbf16>
    %c0_12 = arith.constant 0 : index
    %c0_13 = arith.constant 0 : index
    %17 = vector.load %arg5[%c0_12, %c0_13] : memref<32x16xbf16, #tpu.memory_space<vmem>>, vector<32x16xbf16>
    %c0_14 = arith.constant 0 : index
    %c0_15 = arith.constant 0 : index
    %18 = vector.load %arg6[%c0_14, %c0_15] : memref<32x1xf32, #tpu.memory_space<vmem>>, vector<32x1xf32>
    %cst_16 = arith.constant dense<0.000000e+00> : vector<32x16xf32>
    %19 = tpu.matmul %17, %16, %cst_16 {dimension_numbers = #tpu.dot_dimension_numbers<[1], [0], [0], [1], [0, 0, 1, 1], [], []>} : vector<32x16xbf16>, vector<16x16xbf16>, vector<32x16xf32> -> vector<32x16xf32>
    %20 = vector.broadcast %18 : vector<32x1xf32> to vector<32x16xf32>
    %21 = arith.addf %19, %20 : vector<32x16xf32>
    %cst_17 = arith.constant 0.000000e+00 : f32
    %22 = vector.broadcast %cst_17 : f32 to vector<32x16xf32>
    %23 = arith.maximumf %21, %22 : vector<32x16xf32>
    %c0_18 = arith.constant 0 : index
    %c0_19 = arith.constant 0 : index
    %c0_20 = arith.constant 0 : index
    %24 = vector.load %arg7[%c0_18, %c0_19, %c0_20] : memref<1x32x16xf32, #tpu.memory_space<vmem>>, vector<1x32x16xf32>
    %25 = vector.shape_cast %24 : vector<1x32x16xf32> to vector<32x16xf32>
    %26 = arith.maximumf %25, %23 : vector<32x16xf32>
    %c0_21 = arith.constant 0 : index
    %c0_22 = arith.constant 0 : index
    %c0_23 = arith.constant 0 : index
    %27 = vector.load %arg7[%c0_21, %c0_22, %c0_23] : memref<1x32x16xf32, #tpu.memory_space<vmem>>, vector<1x32x16xf32>
    %28 = vector.shape_cast %27 : vector<1x32x16xf32> to vector<32x16xf32>
    %29 = vector.shape_cast %26 : vector<32x16xf32> to vector<1x32x16xf32>
    tpu.vector_store %arg7[%c0_21, %c0_22, %c0_23], %29 {strides = array<i32>} : memref<1x32x16xf32, #tpu.memory_space<vmem>>, vector<1x32x16xf32>,
    %c1_i32_24 = arith.constant 1 : i32
    %c1_i32_25 = arith.constant 1 : i32
    %30 = arith.muli %c1_i32_24, %c1_i32_25 : i32
    %c0_i32_26 = arith.constant 0 : i32
    %31 = arith.addi %c0_i32_26, %30 : i32
    %c0_27 = arith.constant 0 : index
    %32 = arith.index_cast %31 : i32 to index
    %c0_28 = arith.constant 0 : index
    %c0_29 = arith.constant 0 : index
    %33 = vector.load %arg2[%c0_27, %32, %c0_28, %c0_29] : memref<1x8x7x16xbf16, #tpu.memory_space<vmem>>, vector<1x1x7x16xbf16>
    %34 = vector.shape_cast %33 : vector<1x1x7x16xbf16> to vector<7x16xbf16>
    %c0_30 = arith.constant 0 : index
    %c0_31 = arith.constant 0 : index
    %35 = vector.load %arg3[%c0_30, %c0_31] : memref<16x7xbf16, #tpu.memory_space<vmem>>, vector<16x7xbf16>
    %c0_32 = arith.constant 0 : index
    %c0_33 = arith.constant 0 : index
    %36 = vector.load %arg4[%c0_32, %c0_33] : memref<16x1xf32, #tpu.memory_space<vmem>>, vector<16x1xf32>
    %cst_34 = arith.constant dense<0.000000e+00> : vector<16x16xf32>
    %37 = tpu.matmul %35, %34, %cst_34 {dimension_numbers = #tpu.dot_dimension_numbers<[1], [0], [0], [1], [0, 0, 1, 1], [], []>} : vector<16x7xbf16>, vector<7x16xbf16>, vector<16x16xf32> -> vector<16x16xf32>
    %38 = vector.broadcast %36 : vector<16x1xf32> to vector<16x16xf32>
    %39 = arith.addf %37, %38 : vector<16x16xf32>
    %cst_35 = arith.constant 0.000000e+00 : f32
    %40 = vector.broadcast %cst_35 : f32 to vector<16x16xf32>
    %41 = arith.maximumf %39, %40 : vector<16x16xf32>
    %42 = arith.truncf %41 : vector<16x16xf32> to vector<16x16xbf16>
    %c0_36 = arith.constant 0 : index
    %c0_37 = arith.constant 0 : index
    %43 = vector.load %arg5[%c0_36, %c0_37] : memref<32x16xbf16, #tpu.memory_space<vmem>>, vector<32x16xbf16>
    %c0_38 = arith.constant 0 : index
    %c0_39 = arith.constant 0 : index
    %44 = vector.load %arg6[%c0_38, %c0_39] : memref<32x1xf32, #tpu.memory_space<vmem>>, vector<32x1xf32>
    %cst_40 = arith.constant dense<0.000000e+00> : vector<32x16xf32>
    %45 = tpu.matmul %43, %42, %cst_40 {dimension_numbers = #tpu.dot_dimension_numbers<[1], [0], [0], [1], [0, 0, 1, 1], [], []>} : vector<32x16xbf16>, vector<16x16xbf16>, vector<32x16xf32> -> vector<32x16xf32>
    %46 = vector.broadcast %44 : vector<32x1xf32> to vector<32x16xf32>
    %47 = arith.addf %45, %46 : vector<32x16xf32>
    %cst_41 = arith.constant 0.000000e+00 : f32
    %48 = vector.broadcast %cst_41 : f32 to vector<32x16xf32>
    %49 = arith.maximumf %47, %48 : vector<32x16xf32>
    %c0_42 = arith.constant 0 : index
    %c0_43 = arith.constant 0 : index
    %c0_44 = arith.constant 0 : index
    %50 = vector.load %arg7[%c0_42, %c0_43, %c0_44] : memref<1x32x16xf32, #tpu.memory_space<vmem>>, vector<1x32x16xf32>
    %51 = vector.shape_cast %50 : vector<1x32x16xf32> to vector<32x16xf32>
    %52 = arith.maximumf %51, %49 : vector<32x16xf32>
    %c0_45 = arith.constant 0 : index
    %c0_46 = arith.constant 0 : index
    %c0_47 = arith.constant 0 : index
    %53 = vector.load %arg7[%c0_45, %c0_46, %c0_47] : memref<1x32x16xf32, #tpu.memory_space<vmem>>, vector<1x32x16xf32>
    %54 = vector.shape_cast %53 : vector<1x32x16xf32> to vector<32x16xf32>
    %55 = vector.shape_cast %52 : vector<32x16xf32> to vector<1x32x16xf32>
    tpu.vector_store %arg7[%c0_45, %c0_46, %c0_47], %55 {strides = array<i32>} : memref<1x32x16xf32, #tpu.memory_space<vmem>>, vector<1x32x16xf32>,
    %c2_i32 = arith.constant 2 : i32
    %c1_i32_48 = arith.constant 1 : i32
    %56 = arith.muli %c2_i32, %c1_i32_48 : i32
    %c0_i32_49 = arith.constant 0 : i32
    %57 = arith.addi %c0_i32_49, %56 : i32
    %c0_50 = arith.constant 0 : index
    %58 = arith.index_cast %57 : i32 to index
    %c0_51 = arith.constant 0 : index
    %c0_52 = arith.constant 0 : index
    %59 = vector.load %arg2[%c0_50, %58, %c0_51, %c0_52] : memref<1x8x7x16xbf16, #tpu.memory_space<vmem>>, vector<1x1x7x16xbf16>
    %60 = vector.shape_cast %59 : vector<1x1x7x16xbf16> to vector<7x16xbf16>
    %c0_53 = arith.constant 0 : index
    %c0_54 = arith.constant 0 : index
    %61 = vector.load %arg3[%c0_53, %c0_54] : memref<16x7xbf16, #tpu.memory_space<vmem>>, vector<16x7xbf16>
    %c0_55 = arith.constant 0 : index
    %c0_56 = arith.constant 0 : index
    %62 = vector.load %arg4[%c0_55, %c0_56] : memref<16x1xf32, #tpu.memory_space<vmem>>, vector<16x1xf32>
    %cst_57 = arith.constant dense<0.000000e+00> : vector<16x16xf32>
    %63 = tpu.matmul %61, %60, %cst_57 {dimension_numbers = #tpu.dot_dimension_numbers<[1], [0], [0], [1], [0, 0, 1, 1], [], []>} : vector<16x7xbf16>, vector<7x16xbf16>, vector<16x16xf32> -> vector<16x16xf32>
    %64 = vector.broadcast %62 : vector<16x1xf32> to vector<16x16xf32>
    %65 = arith.addf %63, %64 : vector<16x16xf32>
    %cst_58 = arith.constant 0.000000e+00 : f32
    %66 = vector.broadcast %cst_58 : f32 to vector<16x16xf32>
    %67 = arith.maximumf %65, %66 : vector<16x16xf32>
    %68 = arith.truncf %67 : vector<16x16xf32> to vector<16x16xbf16>
    %c0_59 = arith.constant 0 : index
    %c0_60 = arith.constant 0 : index
    %69 = vector.load %arg5[%c0_59, %c0_60] : memref<32x16xbf16, #tpu.memory_space<vmem>>, vector<32x16xbf16>
    %c0_61 = arith.constant 0 : index
    %c0_62 = arith.constant 0 : index
    %70 = vector.load %arg6[%c0_61, %c0_62] : memref<32x1xf32, #tpu.memory_space<vmem>>, vector<32x1xf32>
    %cst_63 = arith.constant dense<0.000000e+00> : vector<32x16xf32>
    %71 = tpu.matmul %69, %68, %cst_63 {dimension_numbers = #tpu.dot_dimension_numbers<[1], [0], [0], [1], [0, 0, 1, 1], [], []>} : vector<32x16xbf16>, vector<16x16xbf16>, vector<32x16xf32> -> vector<32x16xf32>
    %72 = vector.broadcast %70 : vector<32x1xf32> to vector<32x16xf32>
    %73 = arith.addf %71, %72 : vector<32x16xf32>
    %cst_64 = arith.constant 0.000000e+00 : f32
    %74 = vector.broadcast %cst_64 : f32 to vector<32x16xf32>
    %75 = arith.maximumf %73, %74 : vector<32x16xf32>
    %c0_65 = arith.constant 0 : index
    %c0_66 = arith.constant 0 : index
    %c0_67 = arith.constant 0 : index
    %76 = vector.load %arg7[%c0_65, %c0_66, %c0_67] : memref<1x32x16xf32, #tpu.memory_space<vmem>>, vector<1x32x16xf32>
    %77 = vector.shape_cast %76 : vector<1x32x16xf32> to vector<32x16xf32>
    %78 = arith.maximumf %77, %75 : vector<32x16xf32>
    %c0_68 = arith.constant 0 : index
    %c0_69 = arith.constant 0 : index
    %c0_70 = arith.constant 0 : index
    %79 = vector.load %arg7[%c0_68, %c0_69, %c0_70] : memref<1x32x16xf32, #tpu.memory_space<vmem>>, vector<1x32x16xf32>
    %80 = vector.shape_cast %79 : vector<1x32x16xf32> to vector<32x16xf32>
    %81 = vector.shape_cast %78 : vector<32x16xf32> to vector<1x32x16xf32>
    tpu.vector_store %arg7[%c0_68, %c0_69, %c0_70], %81 {strides = array<i32>} : memref<1x32x16xf32, #tpu.memory_space<vmem>>, vector<1x32x16xf32>,
    %c3_i32 = arith.constant 3 : i32
    %c1_i32_71 = arith.constant 1 : i32
    %82 = arith.muli %c3_i32, %c1_i32_71 : i32
    %c0_i32_72 = arith.constant 0 : i32
    %83 = arith.addi %c0_i32_72, %82 : i32
    %c0_73 = arith.constant 0 : index
    %84 = arith.index_cast %83 : i32 to index
    %c0_74 = arith.constant 0 : index
    %c0_75 = arith.constant 0 : index
    %85 = vector.load %arg2[%c0_73, %84, %c0_74, %c0_75] : memref<1x8x7x16xbf16, #tpu.memory_space<vmem>>, vector<1x1x7x16xbf16>
    %86 = vector.shape_cast %85 : vector<1x1x7x16xbf16> to vector<7x16xbf16>
    %c0_76 = arith.constant 0 : index
    %c0_77 = arith.constant 0 : index
    %87 = vector.load %arg3[%c0_76, %c0_77] : memref<16x7xbf16, #tpu.memory_space<vmem>>, vector<16x7xbf16>
    %c0_78 = arith.constant 0 : index
    %c0_79 = arith.constant 0 : index
    %88 = vector.load %arg4[%c0_78, %c0_79] : memref<16x1xf32, #tpu.memory_space<vmem>>, vector<16x1xf32>
    %cst_80 = arith.constant dense<0.000000e+00> : vector<16x16xf32>
    %89 = tpu.matmul %87, %86, %cst_80 {dimension_numbers = #tpu.dot_dimension_numbers<[1], [0], [0], [1], [0, 0, 1, 1], [], []>} : vector<16x7xbf16>, vector<7x16xbf16>, vector<16x16xf32> -> vector<16x16xf32>
    %90 = vector.broadcast %88 : vector<16x1xf32> to vector<16x16xf32>
    %91 = arith.addf %89, %90 : vector<16x16xf32>
    %cst_81 = arith.constant 0.000000e+00 : f32
    %92 = vector.broadcast %cst_81 : f32 to vector<16x16xf32>
    %93 = arith.maximumf %91, %92 : vector<16x16xf32>
    %94 = arith.truncf %93 : vector<16x16xf32> to vector<16x16xbf16>
    %c0_82 = arith.constant 0 : index
    %c0_83 = arith.constant 0 : index
    %95 = vector.load %arg5[%c0_82, %c0_83] : memref<32x16xbf16, #tpu.memory_space<vmem>>, vector<32x16xbf16>
    %c0_84 = arith.constant 0 : index
    %c0_85 = arith.constant 0 : index
    %96 = vector.load %arg6[%c0_84, %c0_85] : memref<32x1xf32, #tpu.memory_space<vmem>>, vector<32x1xf32>
    %cst_86 = arith.constant dense<0.000000e+00> : vector<32x16xf32>
    %97 = tpu.matmul %95, %94, %cst_86 {dimension_numbers = #tpu.dot_dimension_numbers<[1], [0], [0], [1], [0, 0, 1, 1], [], []>} : vector<32x16xbf16>, vector<16x16xbf16>, vector<32x16xf32> -> vector<32x16xf32>
    %98 = vector.broadcast %96 : vector<32x1xf32> to vector<32x16xf32>
    %99 = arith.addf %97, %98 : vector<32x16xf32>
    %cst_87 = arith.constant 0.000000e+00 : f32
    %100 = vector.broadcast %cst_87 : f32 to vector<32x16xf32>
    %101 = arith.maximumf %99, %100 : vector<32x16xf32>
    %c0_88 = arith.constant 0 : index
    %c0_89 = arith.constant 0 : index
    %c0_90 = arith.constant 0 : index
    %102 = vector.load %arg7[%c0_88, %c0_89, %c0_90] : memref<1x32x16xf32, #tpu.memory_space<vmem>>, vector<1x32x16xf32>
    %103 = vector.shape_cast %102 : vector<1x32x16xf32> to vector<32x16xf32>
    %104 = arith.maximumf %103, %101 : vector<32x16xf32>
    %c0_91 = arith.constant 0 : index
    %c0_92 = arith.constant 0 : index
    %c0_93 = arith.constant 0 : index
    %105 = vector.load %arg7[%c0_91, %c0_92, %c0_93] : memref<1x32x16xf32, #tpu.memory_space<vmem>>, vector<1x32x16xf32>
    %106 = vector.shape_cast %105 : vector<1x32x16xf32> to vector<32x16xf32>
    %107 = vector.shape_cast %104 : vector<32x16xf32> to vector<1x32x16xf32>
    tpu.vector_store %arg7[%c0_91, %c0_92, %c0_93], %107 {strides = array<i32>} : memref<1x32x16xf32, #tpu.memory_space<vmem>>, vector<1x32x16xf32>,
    %c4_i32 = arith.constant 4 : i32
    %c1_i32_94 = arith.constant 1 : i32
    %108 = arith.muli %c4_i32, %c1_i32_94 : i32
    %c0_i32_95 = arith.constant 0 : i32
    %109 = arith.addi %c0_i32_95, %108 : i32
    %c0_96 = arith.constant 0 : index
    %110 = arith.index_cast %109 : i32 to index
    %c0_97 = arith.constant 0 : index
    %c0_98 = arith.constant 0 : index
    %111 = vector.load %arg2[%c0_96, %110, %c0_97, %c0_98] : memref<1x8x7x16xbf16, #tpu.memory_space<vmem>>, vector<1x1x7x16xbf16>
    %112 = vector.shape_cast %111 : vector<1x1x7x16xbf16> to vector<7x16xbf16>
    %c0_99 = arith.constant 0 : index
    %c0_100 = arith.constant 0 : index
    %113 = vector.load %arg3[%c0_99, %c0_100] : memref<16x7xbf16, #tpu.memory_space<vmem>>, vector<16x7xbf16>
    %c0_101 = arith.constant 0 : index
    %c0_102 = arith.constant 0 : index
    %114 = vector.load %arg4[%c0_101, %c0_102] : memref<16x1xf32, #tpu.memory_space<vmem>>, vector<16x1xf32>
    %cst_103 = arith.constant dense<0.000000e+00> : vector<16x16xf32>
    %115 = tpu.matmul %113, %112, %cst_103 {dimension_numbers = #tpu.dot_dimension_numbers<[1], [0], [0], [1], [0, 0, 1, 1], [], []>} : vector<16x7xbf16>, vector<7x16xbf16>, vector<16x16xf32> -> vector<16x16xf32>
    %116 = vector.broadcast %114 : vector<16x1xf32> to vector<16x16xf32>
    %117 = arith.addf %115, %116 : vector<16x16xf32>
    %cst_104 = arith.constant 0.000000e+00 : f32
    %118 = vector.broadcast %cst_104 : f32 to vector<16x16xf32>
    %119 = arith.maximumf %117, %118 : vector<16x16xf32>
    %120 = arith.truncf %119 : vector<16x16xf32> to vector<16x16xbf16>
    %c0_105 = arith.constant 0 : index
    %c0_106 = arith.constant 0 : index
    %121 = vector.load %arg5[%c0_105, %c0_106] : memref<32x16xbf16, #tpu.memory_space<vmem>>, vector<32x16xbf16>
    %c0_107 = arith.constant 0 : index
    %c0_108 = arith.constant 0 : index
    %122 = vector.load %arg6[%c0_107, %c0_108] : memref<32x1xf32, #tpu.memory_space<vmem>>, vector<32x1xf32>
    %cst_109 = arith.constant dense<0.000000e+00> : vector<32x16xf32>
    %123 = tpu.matmul %121, %120, %cst_109 {dimension_numbers = #tpu.dot_dimension_numbers<[1], [0], [0], [1], [0, 0, 1, 1], [], []>} : vector<32x16xbf16>, vector<16x16xbf16>, vector<32x16xf32> -> vector<32x16xf32>
    %124 = vector.broadcast %122 : vector<32x1xf32> to vector<32x16xf32>
    %125 = arith.addf %123, %124 : vector<32x16xf32>
    %cst_110 = arith.constant 0.000000e+00 : f32
    %126 = vector.broadcast %cst_110 : f32 to vector<32x16xf32>
    %127 = arith.maximumf %125, %126 : vector<32x16xf32>
    %c0_111 = arith.constant 0 : index
    %c0_112 = arith.constant 0 : index
    %c0_113 = arith.constant 0 : index
    %128 = vector.load %arg7[%c0_111, %c0_112, %c0_113] : memref<1x32x16xf32, #tpu.memory_space<vmem>>, vector<1x32x16xf32>
    %129 = vector.shape_cast %128 : vector<1x32x16xf32> to vector<32x16xf32>
    %130 = arith.maximumf %129, %127 : vector<32x16xf32>
    %c0_114 = arith.constant 0 : index
    %c0_115 = arith.constant 0 : index
    %c0_116 = arith.constant 0 : index
    %131 = vector.load %arg7[%c0_114, %c0_115, %c0_116] : memref<1x32x16xf32, #tpu.memory_space<vmem>>, vector<1x32x16xf32>
    %132 = vector.shape_cast %131 : vector<1x32x16xf32> to vector<32x16xf32>
    %133 = vector.shape_cast %130 : vector<32x16xf32> to vector<1x32x16xf32>
    tpu.vector_store %arg7[%c0_114, %c0_115, %c0_116], %133 {strides = array<i32>} : memref<1x32x16xf32, #tpu.memory_space<vmem>>, vector<1x32x16xf32>,
    %c5_i32 = arith.constant 5 : i32
    %c1_i32_117 = arith.constant 1 : i32
    %134 = arith.muli %c5_i32, %c1_i32_117 : i32
    %c0_i32_118 = arith.constant 0 : i32
    %135 = arith.addi %c0_i32_118, %134 : i32
    %c0_119 = arith.constant 0 : index
    %136 = arith.index_cast %135 : i32 to index
    %c0_120 = arith.constant 0 : index
    %c0_121 = arith.constant 0 : index
    %137 = vector.load %arg2[%c0_119, %136, %c0_120, %c0_121] : memref<1x8x7x16xbf16, #tpu.memory_space<vmem>>, vector<1x1x7x16xbf16>
    %138 = vector.shape_cast %137 : vector<1x1x7x16xbf16> to vector<7x16xbf16>
    %c0_122 = arith.constant 0 : index
    %c0_123 = arith.constant 0 : index
    %139 = vector.load %arg3[%c0_122, %c0_123] : memref<16x7xbf16, #tpu.memory_space<vmem>>, vector<16x7xbf16>
    %c0_124 = arith.constant 0 : index
    %c0_125 = arith.constant 0 : index
    %140 = vector.load %arg4[%c0_124, %c0_125] : memref<16x1xf32, #tpu.memory_space<vmem>>, vector<16x1xf32>
    %cst_126 = arith.constant dense<0.000000e+00> : vector<16x16xf32>
    %141 = tpu.matmul %139, %138, %cst_126 {dimension_numbers = #tpu.dot_dimension_numbers<[1], [0], [0], [1], [0, 0, 1, 1], [], []>} : vector<16x7xbf16>, vector<7x16xbf16>, vector<16x16xf32> -> vector<16x16xf32>
    %142 = vector.broadcast %140 : vector<16x1xf32> to vector<16x16xf32>
    %143 = arith.addf %141, %142 : vector<16x16xf32>
    %cst_127 = arith.constant 0.000000e+00 : f32
    %144 = vector.broadcast %cst_127 : f32 to vector<16x16xf32>
    %145 = arith.maximumf %143, %144 : vector<16x16xf32>
    %146 = arith.truncf %145 : vector<16x16xf32> to vector<16x16xbf16>
    %c0_128 = arith.constant 0 : index
    %c0_129 = arith.constant 0 : index
    %147 = vector.load %arg5[%c0_128, %c0_129] : memref<32x16xbf16, #tpu.memory_space<vmem>>, vector<32x16xbf16>
    %c0_130 = arith.constant 0 : index
    %c0_131 = arith.constant 0 : index
    %148 = vector.load %arg6[%c0_130, %c0_131] : memref<32x1xf32, #tpu.memory_space<vmem>>, vector<32x1xf32>
    %cst_132 = arith.constant dense<0.000000e+00> : vector<32x16xf32>
    %149 = tpu.matmul %147, %146, %cst_132 {dimension_numbers = #tpu.dot_dimension_numbers<[1], [0], [0], [1], [0, 0, 1, 1], [], []>} : vector<32x16xbf16>, vector<16x16xbf16>, vector<32x16xf32> -> vector<32x16xf32>
    %150 = vector.broadcast %148 : vector<32x1xf32> to vector<32x16xf32>
    %151 = arith.addf %149, %150 : vector<32x16xf32>
    %cst_133 = arith.constant 0.000000e+00 : f32
    %152 = vector.broadcast %cst_133 : f32 to vector<32x16xf32>
    %153 = arith.maximumf %151, %152 : vector<32x16xf32>
    %c0_134 = arith.constant 0 : index
    %c0_135 = arith.constant 0 : index
    %c0_136 = arith.constant 0 : index
    %154 = vector.load %arg7[%c0_134, %c0_135, %c0_136] : memref<1x32x16xf32, #tpu.memory_space<vmem>>, vector<1x32x16xf32>
    %155 = vector.shape_cast %154 : vector<1x32x16xf32> to vector<32x16xf32>
    %156 = arith.maximumf %155, %153 : vector<32x16xf32>
    %c0_137 = arith.constant 0 : index
    %c0_138 = arith.constant 0 : index
    %c0_139 = arith.constant 0 : index
    %157 = vector.load %arg7[%c0_137, %c0_138, %c0_139] : memref<1x32x16xf32, #tpu.memory_space<vmem>>, vector<1x32x16xf32>
    %158 = vector.shape_cast %157 : vector<1x32x16xf32> to vector<32x16xf32>
    %159 = vector.shape_cast %156 : vector<32x16xf32> to vector<1x32x16xf32>
    tpu.vector_store %arg7[%c0_137, %c0_138, %c0_139], %159 {strides = array<i32>} : memref<1x32x16xf32, #tpu.memory_space<vmem>>, vector<1x32x16xf32>,
    %c6_i32 = arith.constant 6 : i32
    %c1_i32_140 = arith.constant 1 : i32
    %160 = arith.muli %c6_i32, %c1_i32_140 : i32
    %c0_i32_141 = arith.constant 0 : i32
    %161 = arith.addi %c0_i32_141, %160 : i32
    %c0_142 = arith.constant 0 : index
    %162 = arith.index_cast %161 : i32 to index
    %c0_143 = arith.constant 0 : index
    %c0_144 = arith.constant 0 : index
    %163 = vector.load %arg2[%c0_142, %162, %c0_143, %c0_144] : memref<1x8x7x16xbf16, #tpu.memory_space<vmem>>, vector<1x1x7x16xbf16>
    %164 = vector.shape_cast %163 : vector<1x1x7x16xbf16> to vector<7x16xbf16>
    %c0_145 = arith.constant 0 : index
    %c0_146 = arith.constant 0 : index
    %165 = vector.load %arg3[%c0_145, %c0_146] : memref<16x7xbf16, #tpu.memory_space<vmem>>, vector<16x7xbf16>
    %c0_147 = arith.constant 0 : index
    %c0_148 = arith.constant 0 : index
    %166 = vector.load %arg4[%c0_147, %c0_148] : memref<16x1xf32, #tpu.memory_space<vmem>>, vector<16x1xf32>
    %cst_149 = arith.constant dense<0.000000e+00> : vector<16x16xf32>
    %167 = tpu.matmul %165, %164, %cst_149 {dimension_numbers = #tpu.dot_dimension_numbers<[1], [0], [0], [1], [0, 0, 1, 1], [], []>} : vector<16x7xbf16>, vector<7x16xbf16>, vector<16x16xf32> -> vector<16x16xf32>
    %168 = vector.broadcast %166 : vector<16x1xf32> to vector<16x16xf32>
    %169 = arith.addf %167, %168 : vector<16x16xf32>
    %cst_150 = arith.constant 0.000000e+00 : f32
    %170 = vector.broadcast %cst_150 : f32 to vector<16x16xf32>
    %171 = arith.maximumf %169, %170 : vector<16x16xf32>
    %172 = arith.truncf %171 : vector<16x16xf32> to vector<16x16xbf16>
    %c0_151 = arith.constant 0 : index
    %c0_152 = arith.constant 0 : index
    %173 = vector.load %arg5[%c0_151, %c0_152] : memref<32x16xbf16, #tpu.memory_space<vmem>>, vector<32x16xbf16>
    %c0_153 = arith.constant 0 : index
    %c0_154 = arith.constant 0 : index
    %174 = vector.load %arg6[%c0_153, %c0_154] : memref<32x1xf32, #tpu.memory_space<vmem>>, vector<32x1xf32>
    %cst_155 = arith.constant dense<0.000000e+00> : vector<32x16xf32>
    %175 = tpu.matmul %173, %172, %cst_155 {dimension_numbers = #tpu.dot_dimension_numbers<[1], [0], [0], [1], [0, 0, 1, 1], [], []>} : vector<32x16xbf16>, vector<16x16xbf16>, vector<32x16xf32> -> vector<32x16xf32>
    %176 = vector.broadcast %174 : vector<32x1xf32> to vector<32x16xf32>
    %177 = arith.addf %175, %176 : vector<32x16xf32>
    %cst_156 = arith.constant 0.000000e+00 : f32
    %178 = vector.broadcast %cst_156 : f32 to vector<32x16xf32>
    %179 = arith.maximumf %177, %178 : vector<32x16xf32>
    %c0_157 = arith.constant 0 : index
    %c0_158 = arith.constant 0 : index
    %c0_159 = arith.constant 0 : index
    %180 = vector.load %arg7[%c0_157, %c0_158, %c0_159] : memref<1x32x16xf32, #tpu.memory_space<vmem>>, vector<1x32x16xf32>
    %181 = vector.shape_cast %180 : vector<1x32x16xf32> to vector<32x16xf32>
    %182 = arith.maximumf %181, %179 : vector<32x16xf32>
    %c0_160 = arith.constant 0 : index
    %c0_161 = arith.constant 0 : index
    %c0_162 = arith.constant 0 : index
    %183 = vector.load %arg7[%c0_160, %c0_161, %c0_162] : memref<1x32x16xf32, #tpu.memory_space<vmem>>, vector<1x32x16xf32>
    %184 = vector.shape_cast %183 : vector<1x32x16xf32> to vector<32x16xf32>
    %185 = vector.shape_cast %182 : vector<32x16xf32> to vector<1x32x16xf32>
    tpu.vector_store %arg7[%c0_160, %c0_161, %c0_162], %185 {strides = array<i32>} : memref<1x32x16xf32, #tpu.memory_space<vmem>>, vector<1x32x16xf32>,
    %c7_i32 = arith.constant 7 : i32
    %c1_i32_163 = arith.constant 1 : i32
    %186 = arith.muli %c7_i32, %c1_i32_163 : i32
    %c0_i32_164 = arith.constant 0 : i32
    %187 = arith.addi %c0_i32_164, %186 : i32
    %c0_165 = arith.constant 0 : index
    %188 = arith.index_cast %187 : i32 to index
    %c0_166 = arith.constant 0 : index
    %c0_167 = arith.constant 0 : index
    %189 = vector.load %arg2[%c0_165, %188, %c0_166, %c0_167] : memref<1x8x7x16xbf16, #tpu.memory_space<vmem>>, vector<1x1x7x16xbf16>
    %190 = vector.shape_cast %189 : vector<1x1x7x16xbf16> to vector<7x16xbf16>
    %c0_168 = arith.constant 0 : index
    %c0_169 = arith.constant 0 : index
    %191 = vector.load %arg3[%c0_168, %c0_169] : memref<16x7xbf16, #tpu.memory_space<vmem>>, vector<16x7xbf16>
    %c0_170 = arith.constant 0 : index
    %c0_171 = arith.constant 0 : index
    %192 = vector.load %arg4[%c0_170, %c0_171] : memref<16x1xf32, #tpu.memory_space<vmem>>, vector<16x1xf32>
    %cst_172 = arith.constant dense<0.000000e+00> : vector<16x16xf32>
    %193 = tpu.matmul %191, %190, %cst_172 {dimension_numbers = #tpu.dot_dimension_numbers<[1], [0], [0], [1], [0, 0, 1, 1], [], []>} : vector<16x7xbf16>, vector<7x16xbf16>, vector<16x16xf32> -> vector<16x16xf32>
    %194 = vector.broadcast %192 : vector<16x1xf32> to vector<16x16xf32>
    %195 = arith.addf %193, %194 : vector<16x16xf32>
    %cst_173 = arith.constant 0.000000e+00 : f32
    %196 = vector.broadcast %cst_173 : f32 to vector<16x16xf32>
    %197 = arith.maximumf %195, %196 : vector<16x16xf32>
    %198 = arith.truncf %197 : vector<16x16xf32> to vector<16x16xbf16>
    %c0_174 = arith.constant 0 : index
    %c0_175 = arith.constant 0 : index
    %199 = vector.load %arg5[%c0_174, %c0_175] : memref<32x16xbf16, #tpu.memory_space<vmem>>, vector<32x16xbf16>
    %c0_176 = arith.constant 0 : index
    %c0_177 = arith.constant 0 : index
    %200 = vector.load %arg6[%c0_176, %c0_177] : memref<32x1xf32, #tpu.memory_space<vmem>>, vector<32x1xf32>
    %cst_178 = arith.constant dense<0.000000e+00> : vector<32x16xf32>
    %201 = tpu.matmul %199, %198, %cst_178 {dimension_numbers = #tpu.dot_dimension_numbers<[1], [0], [0], [1], [0, 0, 1, 1], [], []>} : vector<32x16xbf16>, vector<16x16xbf16>, vector<32x16xf32> -> vector<32x16xf32>
    %202 = vector.broadcast %200 : vector<32x1xf32> to vector<32x16xf32>
    %203 = arith.addf %201, %202 : vector<32x16xf32>
    %cst_179 = arith.constant 0.000000e+00 : f32
    %204 = vector.broadcast %cst_179 : f32 to vector<32x16xf32>
    %205 = arith.maximumf %203, %204 : vector<32x16xf32>
    %c0_180 = arith.constant 0 : index
    %c0_181 = arith.constant 0 : index
    %c0_182 = arith.constant 0 : index
    %206 = vector.load %arg7[%c0_180, %c0_181, %c0_182] : memref<1x32x16xf32, #tpu.memory_space<vmem>>, vector<1x32x16xf32>
    %207 = vector.shape_cast %206 : vector<1x32x16xf32> to vector<32x16xf32>
    %208 = arith.maximumf %207, %205 : vector<32x16xf32>
    %c0_183 = arith.constant 0 : index
    %c0_184 = arith.constant 0 : index
    %c0_185 = arith.constant 0 : index
    %209 = vector.load %arg7[%c0_183, %c0_184, %c0_185] : memref<1x32x16xf32, #tpu.memory_space<vmem>>, vector<1x32x16xf32>
    %210 = vector.shape_cast %209 : vector<1x32x16xf32> to vector<32x16xf32>
    %211 = vector.shape_cast %208 : vector<32x16xf32> to vector<1x32x16xf32>
    tpu.vector_store %arg7[%c0_183, %c0_184, %c0_185], %211 {strides = array<i32>} : memref<1x32x16xf32, #tpu.memory_space<vmem>>, vector<1x32x16xf32>,
    %c8_i32 = arith.constant 8 : i32
    return
  }
  func.func @transform_0(%arg0: i32, %arg1: i32) -> (i32, i32, i32, i32) {
    %c0_i32 = arith.constant 0 : i32
    %c0_i32_0 = arith.constant 0 : i32
    %c0_i32_1 = arith.constant 0 : i32
    return %arg1, %c0_i32, %c0_i32_0, %arg0 : i32, i32, i32, i32
  }
  func.func @transform_1(%arg0: i32, %arg1: i32) -> (i32, i32) {
    %c0_i32 = arith.constant 0 : i32
    %c0_i32_0 = arith.constant 0 : i32
    %c0_i32_1 = arith.constant 0 : i32
    return %c0_i32, %c0_i32_0 : i32, i32
  }
  func.func @transform_2(%arg0: i32, %arg1: i32) -> (i32, i32) {
    %c0_i32 = arith.constant 0 : i32
    %c0_i32_0 = arith.constant 0 : i32
    %c0_i32_1 = arith.constant 0 : i32
    return %c0_i32, %c0_i32_0 : i32, i32
  }
  func.func @transform_3(%arg0: i32, %arg1: i32) -> (i32, i32) {
    %c0_i32 = arith.constant 0 : i32
    %c0_i32_0 = arith.constant 0 : i32
    %c0_i32_1 = arith.constant 0 : i32
    return %c0_i32, %c0_i32_0 : i32, i32
  }
  func.func @transform_4(%arg0: i32, %arg1: i32) -> (i32, i32) {
    %c0_i32 = arith.constant 0 : i32
    %c0_i32_0 = arith.constant 0 : i32
    %c0_i32_1 = arith.constant 0 : i32
    return %c0_i32, %c0_i32_0 : i32, i32
  }
  func.func @transform_5(%arg0: i32, %arg1: i32) -> (i32, i32, i32) {
    %c0_i32 = arith.constant 0 : i32
    %c0_i32_0 = arith.constant 0 : i32
    return %arg1, %c0_i32, %arg0 : i32, i32, i32
  }
}

</mosaic_0001>

<bundles_post_ra>
// kernel: tpu_custom_call.1
= control target key start
LH: loop header
LB: loop body
LE: loop exit
PB: predicated region body
PF: predicated region fallthrough
CT: control target
= control target key end

     0   :  { %s2107_s18 = smov 0   ;;  %s2109_s19 = smov 0   ;;  %s2411_s0 = inlined_call_operand.vmem [shape: bf16[2,8,7,16], index: 0, kind: input, shape index: {}]   ;;  %s2412_s1 = inlined_call_operand.vmem [shape: bf16[16,7], index: 1, kind: input, shape index: {}]   ;;  %s2413_s2 = inlined_call_operand.vmem [shape: f32[16,1], index: 2, kind: input, shape index: {}]   ;;  %s2414_s3 = inlined_call_operand.vmem [shape: bf16[32,16], index: 3, kind: input, shape index: {}]   ;;  %s2415_s4 = inlined_call_operand.vmem [shape: f32[32,1], index: 4, kind: input, shape index: {}]   ;;  %s2416_s5 = inlined_call_operand.vmem [shape: f32[2,32,16], index: 5, kind: output, shape index: {}]  }
   0x1   :  { %s2111_s20 = smov 0  }
   0x2 LB: > { %s24_s21 = sadd.s32 1, %s2066_s19  ;;  %p1793_p0 = scmp.ge.s32.totalorder %s2070_s20, 1  ;;  %s2070_s20 = sphi %s2111_s20, %s15_s20   ;;  %s2066_s19 = sphi %s2109_s19, %s2418_s19   ;;  %s2062_s18 = sphi %s2107_s18, %s2417_s18  }
   0x3   : > { %p25_p1 = scmp.ge.s32.totalorder %s24_s21, 2  ;;  %p206_p2 = scmp.lt.s32.totalorder %s2070_s20, 3 }
   0x5   : > { %s2420_s21 = smov (%p25_p1, %s24_s21), 0  ;;  %p207_p3 = pnand %p1793_p0, %p206_p2 }
   0x6   : > { %v265_v0 = vld [vmem:[%s2413_s2] sm:$0xff] (!%p207_p3)  ;;  %p240_p4 = scmp.lt.s32.totalorder (!%p207_p3), %s2062_s18, 1  ;;  %vm286_vm0 = vcmask (!%p207_p3), 1042432   ;;  %v2072_v1 = vmov (!%p207_p3), 0   ;;  %v2073_v2 = vmov (!%p207_p3), 0.0   ;;  %vm287_vm1 = vcmask (!%p207_p3), 1043456  }
   0x7   : > { %210 = sbr.rel (%p207_p3) target bundleno = 539 (0x21b), region = 40  ;;  %2022 = vset.pattern.permute.xlu0 (!%p207_p3), %v2072_v1  ;;  %1897 = vmatprep.subr.bf16.mxu0 (!%p207_p3), %v2073_v2  ;;  %v2074_v3 = vmov (!%p207_p3), 65535   ;;  %v266_v5 = vld [vmem:[%s2413_s2 + $0x8] sm:$0xff] (!%p207_p3)  ;;  %vm2075_vm2 = vmmov (!%p207_p3), 0   ;;  %v2024_v10 = vld [vmem:[%s2412_s1] sm:$0xff] (!%p207_p3)   ;;  %vm282_vm3 = vcmask (!%p207_p3), 56320  }
   0x8   : > { %269 = vperm.xlu0 (!%p207_p3), %2022, %v265_v0   ;;  %2023 = vset.pattern.permute.xlu1 (!%p207_p3), %v2072_v1  ;;  %v288_v4 = vsel (!%p207_p3), %vm286_vm0, 4294967295, %v2074_v3  ;;  %v2025_v13 = vld [vmem:[%s2412_s1] sm:$0xff] (!%p207_p3)   ;;  %v342_v21 = vld [vmem:[%s2415_s4 + $0x8] sm:$0xff] (!%p207_p3)  ;;  %v343_v23 = vld [vmem:[%s2415_s4 + $0x10] sm:$0xff] (!%p207_p3)  ;;  %vm257_vm4 = vcmask (!%p207_p3), 130048   ;;  %v2076_v36 = vmov (!%p207_p3), -inf  }
   0x9   : > { %454 = vperm.xlu1 (!%p207_p3), %2023, %v265_v0   ;;  %1899 = vmatprep.mubr.msk.bf16.mxu0 (!%p207_p3), %vm2075_vm2, %v2073_v2  ;;  %v2137_v6 = vsel (!%p207_p3), %vm287_vm1, %v288_v4, 0  ;;  %v2026_v16 = vld [vmem:[%s2412_s1] sm:$0xff] (!%p207_p3)   ;;  %v344_v24 = vld [vmem:[%s2415_s4 + $0x18] sm:$0xff] (!%p207_p3)  ;;  %v2033_v52 = vld [vmem:[%s2414_s3 + $0x8] sm:$0xff] (!%p207_p3)  }
   0xa   : > { %v341_v19 = vld [vmem:[%s2415_s4] sm:$0xff] (!%p207_p3)  ;;  %v2035_v1 = vld [vmem:[%s2414_s3 + $0x8] sm:$0xff] (!%p207_p3)  }
   0xb   : > { %v2027_v20 = vld [vmem:[%s2412_s1] sm:$0xff] (!%p207_p3)  }
   0xc   : > { %274 = vperm.xlu0 (!%p207_p3), %2022, %v266_v5   ;;  %v2028_v26 = vld [vmem:[%s2412_s1] sm:$0xff] (!%p207_p3)  }
   0xd   : > { %459 = vperm.xlu1 (!%p207_p3), %2023, %v266_v5   ;;  %v2029_v29 = vld [vmem:[%s2412_s1] sm:$0xff] (!%p207_p3)  }
   0xe   : > { %s2422_s18 = smov (!%p240_p4, %s2062_s18), 1  ;;  %v2030_v32 = vld [vmem:[%s2412_s1] sm:$0xff]  }
   0xf   : > { %s1855_s26 = sshll.u32 %s2422_s18, 5  ;;  %v2031_v34 = vld [vmem:[%s2412_s1] sm:$0xff]  }
  0x10   : > { %s2144_s29 = scalar_lea.vmem %s2411_s0, %s1855_s26  ;;  %634 = vperm.xlu0 %2022, %v265_v0   ;;  %v2032_v35 = vld [vmem:[%s2414_s3] sm:$0xff]   ;;  %s2236_s13 = scalar_lea.vmem %s2416_s5, %s1855_s26 }
  0x11   : > { %v262_v7 = vld [vmem:[%s2144_s29] sm:$0xf]  ;;  %v1804_v8 = vld [vmem:[%s2144_s29 + $0x4] sm:$0xf]  ;;  %639 = vperm.xlu1 %2023, %v266_v5   ;;  %v1811_v12 = vld [vmem:[%s2144_s29 + $0x8] sm:$0xf]  ;;  %1905 = vmatprep.mubr.msk.bf16.mxu1 %vm257_vm4, %v2032_v35 }
  0x12   : > { %v291_v9 = vand.u32 %v2137_v6, %v262_v7  ;;  %v471_v11 = vand.u32 %v1804_v8, %v2137_v6  ;;  %v651_v14 = vand.u32 %v1811_v12, %v2137_v6  ;;  %v1818_v15 = vld [vmem:[%s2144_s29 + $0xc] sm:$0xf]  ;;  %v1825_v18 = vld [vmem:[%s2144_s29 + $0x10] sm:$0xf]  ;;  %v1832_v25 = vld [vmem:[%s2144_s29 + $0x14] sm:$0xf] }
  0x13   : > { %v831_v17 = vand.u32 %v1818_v15, %v2137_v6  ;;  %v1011_v22 = vand.u32 %v1825_v18, %v2137_v6  ;;  %v1191_v27 = vand.u32 %v1832_v25, %v2137_v6  ;;  %v1839_v28 = vld [vmem:[%s2144_s29 + $0x18] sm:$0xf]  ;;  %v1846_v31 = vld [vmem:[%s2144_s29 + $0x1c] sm:$0xf]  ;;  %260 = vst.msk [vmem:[%s2236_s13 + $0x10] sm:$0xff] %vm257_vm4, %v2076_v36  ;;  %258 = vst.msk [vmem:[%s2236_s13] sm:$0xff] %vm257_vm4, %v2076_v36 }
  0x14   : > { %1898 = vmatpush3.bf16.msra.mxu0 %v291_v9  ;;  %814 = vperm.xlu0 %2022, %v265_v0   ;;  %v1371_v30 = vand.u32 %v1839_v28, %v2137_v6  ;;  %v1551_v33 = vand.u32 %v1846_v31, %v2137_v6  ;;  %259 = vst.msk [vmem:[%s2236_s13 + $0x8] sm:$0xff] %vm257_vm4, %v2076_v36  ;;  %261 = vst.msk [vmem:[%s2236_s13 + $0x18] sm:$0xff] %vm257_vm4, %v2076_v36  ;;  %v2034_v55 = vld [vmem:[%s2414_s3] sm:$0xff]  }
  0x15   : > { %1909 = vmatprep.subr.bf16.mxu0 %v2073_v2  ;;  %819 = vperm.xlu1 %2023, %v266_v5   ;;  %v2036_v4 = vld [vmem:[%s2414_s3] sm:$0xff]  }
  0x17   : > { %1900 = vmatmul.mubr.msk.bf16.vlgmr.msra.gmra.mrb[0].mxu0 %vm282_vm3, %v2024_v10 }
  0x18   : > { %1910 = vmatpush3.bf16.msra.mxu0 %v471_v11  ;;  %1911 = vmatprep.mubr.msk.bf16.mxu0 %vm2075_vm2, %v2073_v2 }
  0x19   : > { %1921 = vmatprep.subr.bf16.mxu0 %v2073_v2  ;;  %994 = vperm.xlu0 %2022, %v265_v0  }
  0x1a   : > { %999 = vperm.xlu1 %2023, %v266_v5  }
  0x1d   : > { %1174 = vperm.xlu0 %2022, %v265_v0  }
  0x1e   : > { %1179 = vperm.xlu1 %2023, %v266_v5  }
  0x1f   : > { %1912 = vmatmul.mubr.msk.bf16.vlgmr.msra.gmra.mrb[4].mxu0 %vm282_vm3, %v2025_v13 }
  0x20   : > { %1922 = vmatpush3.bf16.msra.mxu0 %v651_v14  ;;  %1923 = vmatprep.mubr.msk.bf16.mxu0 %vm2075_vm2, %v2073_v2  ;;  %v2037_v14 = vld [vmem:[%s2414_s3 + $0x8] sm:$0xff]  }
  0x21   : > { %1933 = vmatprep.subr.bf16.mxu0 %v2073_v2  ;;  %1354 = vperm.xlu0 %2022, %v265_v0  }
  0x22   : > { %1359 = vperm.xlu1 %2023, %v266_v5  }
  0x25   : > { %1534 = vperm.xlu0 %2022, %v265_v0  }
  0x26   : > { %1539 = vperm.xlu1 %2023, %v266_v5  }
  0x27   : > { %1924 = vmatmul.mubr.msk.bf16.vlgmr.msra.gmra.mrb[8].mxu0 %vm282_vm3, %v2026_v16 }
  0x28   : > { %1934 = vmatpush3.bf16.msra.mxu0 %v831_v17  ;;  %1935 = vmatprep.mubr.msk.bf16.mxu0 %vm2075_vm2, %v2073_v2  ;;  %v2038_v17 = vld [vmem:[%s2414_s3] sm:$0xff]  }
  0x29   : > { %1945 = vmatprep.subr.bf16.mxu0 %v2073_v2  ;;  %347 = vperm.xlu0 %2022, %v341_v19  }
  0x2a   : > { %352 = vperm.xlu1 %2023, %v342_v21  }
  0x2d   : > { %357 = vperm.xlu0 %2022, %v343_v23  }
  0x2e   : > { %362 = vperm.xlu1 %2023, %v344_v24  }
  0x2f   : > { %1936 = vmatmul.mubr.msk.bf16.vlgmr.msra.gmra.mrb[12].mxu0 %vm282_vm3, %v2027_v20 }
  0x30   : > { %1946 = vmatpush3.bf16.msra.mxu0 %v1011_v22  ;;  %1947 = vmatprep.mubr.msk.bf16.mxu0 %vm2075_vm2, %v2073_v2 }
  0x31   : > { %1957 = vmatprep.subr.bf16.mxu0 %v2073_v2  ;;  %527 = vperm.xlu0 %2022, %v341_v19  }
  0x32   : > { %532 = vperm.xlu1 %2023, %v342_v21  }
  0x35   : > { %537 = vperm.xlu0 %2022, %v343_v23  }
  0x36   : > { %542 = vperm.xlu1 %2023, %v344_v24  }
  0x37   : > { %1948 = vmatmul.mubr.msk.bf16.vlgmr.msra.gmra.mrb[16].mxu0 %vm282_vm3, %v2028_v26 }
  0x38   : > { %1958 = vmatpush3.bf16.msra.mxu0 %v1191_v27  ;;  %1959 = vmatprep.mubr.msk.bf16.mxu0 %vm2075_vm2, %v2073_v2  ;;  %v2039_v27 = vld [vmem:[%s2414_s3 + $0x8] sm:$0xff]  }
  0x39   : > { %1969 = vmatprep.subr.bf16.mxu0 %v2073_v2  ;;  %707 = vperm.xlu0 %2022, %v341_v19  }
  0x3a   : > { %712 = vperm.xlu1 %2023, %v342_v21  }
  0x3d   : > { %717 = vperm.xlu0 %2022, %v343_v23  }
  0x3e   : > { %722 = vperm.xlu1 %2023, %v344_v24  }
  0x3f   : > { %1960 = vmatmul.mubr.msk.bf16.vlgmr.msra.gmra.mrb[20].mxu0 %vm282_vm3, %v2029_v29 }
  0x40   : > { %1970 = vmatpush3.bf16.msra.mxu0 %v1371_v30  ;;  %1971 = vmatprep.mubr.msk.bf16.mxu0 %vm2075_vm2, %v2073_v2  ;;  %v2040_v30 = vld [vmem:[%s2414_s3] sm:$0xff]  }
  0x41   : > { %1981 = vmatprep.subr.bf16.mxu0 %v2073_v2  ;;  %887 = vperm.xlu0 %2022, %v341_v19  }
  0x42   : > { %892 = vperm.xlu1 %2023, %v342_v21  }
  0x45   : > { %897 = vperm.xlu0 %2022, %v343_v23  }
  0x46   : > { %902 = vperm.xlu1 %2023, %v344_v24  }
  0x47   : > { %1972 = vmatmul.mubr.msk.bf16.vlgmr.msra.gmra.mrb[24].mxu0 %vm282_vm3, %v2030_v32 }
  0x48   : > { %1982 = vmatpush3.bf16.msra.mxu0 %v1551_v33  ;;  %1983 = vmatprep.mubr.msk.bf16.mxu0 %vm2075_vm2, %v2073_v2 }
  0x49   : > { %1067 = vperm.xlu0 %2022, %v341_v19  }
  0x4a   : > { %1072 = vperm.xlu1 %2023, %v342_v21  }
  0x4d   : > { %1077 = vperm.xlu0 %2022, %v343_v23  }
  0x4e   : > { %1082 = vperm.xlu1 %2023, %v344_v24  }
  0x4f   : > { %1984 = vmatmul.mubr.msk.bf16.vlgmr.msra.gmra.mrb[28].mxu0 %vm282_vm3, %v2031_v34 }
  0x51   : > { %1247 = vperm.xlu0 %2022, %v341_v19  }
  0x52   : > { %1252 = vperm.xlu1 %2023, %v342_v21  }
  0x55   : > { %1257 = vperm.xlu0 %2022, %v343_v23  }
  0x56   : > { %1262 = vperm.xlu1 %2023, %v344_v24  }
  0x59   : > { %1427 = vperm.xlu0 %2022, %v341_v19  }
  0x5a   : > { %1432 = vperm.xlu1 %2023, %v342_v21  }
  0x5d   : > { %1437 = vperm.xlu0 %2022, %v343_v23  }
  0x5e   : > { %1442 = vperm.xlu1 %2023, %v344_v24  }
  0x61   : > { %1607 = vperm.xlu0 %2022, %v341_v19  }
  0x62   : > { %1612 = vperm.xlu1 %2023, %v342_v21  }
  0x65   : > { %1617 = vperm.xlu0 %2022, %v343_v23  }
  0x66   : > { %1622 = vperm.xlu1 %2023, %v344_v24  }
  0x87   : > { %v270_v37 = vpop.permute.xlu0 %269 }
  0x88   : > { %v455_v45 = vpop.permute.xlu1 %454 }
  0x8b   : > { %v275_v41 = vpop.permute.xlu0 %274 }
  0x8c   : > { %v460_v53 = vpop.permute.xlu1 %459 }
  0x8f   : > { %v635_v61 = vpop.permute.xlu0 %634 }
  0x90   : > { %v640_v2 = vpop.permute.xlu1 %639 }
  0x93   : > { %v815_v10 = vpop.permute.xlu0 %814 }
  0x94   : > { %v820_v15 = vpop.permute.xlu1 %819 }
  0x98   : > { %v995_v23 = vpop.permute.xlu0 %994 }
  0x99   : > { %v1000_v28 = vpop.permute.xlu1 %999 }
  0x9c   : > { %v1175_v36 = vpop.permute.xlu0 %1174 }
  0xea   : > { %v327_v38 = vpop.f32.mrb[0].mxu0 }
  0xeb   : > { %v328_v39 = vadd.f32 %v327_v38, %v270_v37  ;;  %v1901_v40 = vpop.f32.mrb[1].mxu0 }
  0xec   : > { %v330_v42 = vpop.f32.mrb[2].mxu0  ;;  %v2041_v40 = vld [vmem:[%s2414_s3 + $0x8] sm:$0xff]  }
  0xed   : > { %v331_v43 = vadd.f32 %v330_v42, %v275_v41  ;;  %v1902_v44 = vpop.f32.mrb[3].mxu0  ;;  %v334_v46 = vmax.f32 %v328_v39, 0.0  ;;  %v1180_v41 = vpop.permute.xlu1 %1179 }
  0xef   : > { %v335_v47 = vmax.f32 %v331_v43, 0.0  ;;  %v2042_v43 = vld [vmem:[%s2414_s3] sm:$0xff]  }
  0xf1   : > { %v336_v48 = vpack.c.bf16 %v335_v47, %v334_v46 }
  0xf2   : > { %v507_v49 = vpop.f32.mrb[4].mxu0 }
  0xf3   : > { %v508_v50 = vadd.f32 %v507_v49, %v455_v45  ;;  %1903 = vmatprep.subr.bf16.mxu1 %v336_v48  ;;  %v1913_v51 = vpop.f32.mrb[5].mxu0  ;;  %v1355_v49 = vpop.permute.xlu0 %1354 }
  0xf4   : > { %1904 = vmatpush3.bf16.msra.mxu1 %v336_v48  ;;  %v510_v54 = vpop.f32.mrb[6].mxu0 }
  0xf5   : > { %v511_v56 = vadd.f32 %v510_v54, %v460_v53  ;;  %v1914_v57 = vpop.f32.mrb[7].mxu0  ;;  %v514_v58 = vmax.f32 %v508_v50, 0.0  ;;  %v2043_v53 = vld [vmem:[%s2414_s3 + $0x8] sm:$0xff]   ;;  %v1360_v54 = vpop.permute.xlu1 %1359 }
  0xf7   : > { %v515_v59 = vmax.f32 %v511_v56, 0.0  ;;  %1906 = vmatmul.mubr.msk.bf16.vlgmr.msra.gmra.mrb[0].mxu1 %vm257_vm4, %v2033_v52  ;;  %v2044_v56 = vld [vmem:[%s2414_s3] sm:$0xff]  }
  0xf8   : > { %1917 = vmatprep.mubr.msk.bf16.mxu1 %vm257_vm4, %v2034_v55 }
  0xf9   : > { %v516_v60 = vpack.c.bf16 %v515_v59, %v514_v58 }
  0xfa   : > { %v687_v62 = vpop.f32.mrb[8].mxu0 }
  0xfb   : > { %v688_v63 = vadd.f32 %v687_v62, %v635_v61  ;;  %1915 = vmatprep.subr.bf16.mxu1 %v516_v60  ;;  %v1925_v0 = vpop.f32.mrb[9].mxu0  ;;  %v1535_v62 = vpop.permute.xlu0 %1534 }
  0xfc   : > { %1916 = vmatpush3.bf16.msra.mxu1 %v516_v60  ;;  %v690_v3 = vpop.f32.mrb[10].mxu0 }
  0xfd   : > { %v691_v5 = vadd.f32 %v690_v3, %v640_v2  ;;  %v1926_v6 = vpop.f32.mrb[11].mxu0  ;;  %v694_v7 = vmax.f32 %v688_v63, 0.0  ;;  %v2045_v2 = vld [vmem:[%s2414_s3 + $0x8] sm:$0xff]   ;;  %v1540_v3 = vpop.permute.xlu1 %1539 }
  0xff   : > { %v695_v8 = vmax.f32 %v691_v5, 0.0  ;;  %1918 = vmatmul.mubr.msk.bf16.vlgmr.msra.gmra.mrb[4].mxu1 %vm257_vm4, %v2035_v1  ;;  %v2046_v5 = vld [vmem:[%s2414_s3] sm:$0xff]  }
 0x100   : > { %1929 = vmatprep.mubr.msk.bf16.mxu1 %vm257_vm4, %v2036_v4 }
 0x101   : > { %v696_v9 = vpack.c.bf16 %v695_v8, %v694_v7 }
 0x102   : > { %v867_v11 = vpop.f32.mrb[12].mxu0 }
 0x103   : > { %v868_v12 = vadd.f32 %v867_v11, %v815_v10  ;;  %1927 = vmatprep.subr.bf16.mxu1 %v696_v9  ;;  %v1937_v13 = vpop.f32.mrb[13].mxu0  ;;  %v2047_v11 = vld [vmem:[%s2414_s3 + $0x8] sm:$0xff]  }
 0x104   : > { %1928 = vmatpush3.bf16.msra.mxu1 %v696_v9  ;;  %v870_v16 = vpop.f32.mrb[14].mxu0  ;;  %v353_v13 = vpop.permute.xlu1 %352 }
 0x105   : > { %v871_v18 = vadd.f32 %v870_v16, %v820_v15  ;;  %v1938_v19 = vpop.f32.mrb[15].mxu0  ;;  %v874_v20 = vmax.f32 %v868_v12, 0.0  ;;  %v348_v12 = vpop.permute.xlu0 %347 }
 0x107   : > { %v875_v21 = vmax.f32 %v871_v18, 0.0  ;;  %1930 = vmatmul.mubr.msk.bf16.vlgmr.msra.gmra.mrb[8].mxu1 %vm257_vm4, %v2037_v14 }
 0x108   : > { %1941 = vmatprep.mubr.msk.bf16.mxu1 %vm257_vm4, %v2038_v17  ;;  %v363_v15 = vpop.permute.xlu1 %362 }
 0x109   : > { %v876_v22 = vpack.c.bf16 %v875_v21, %v874_v20  ;;  %v358_v14 = vpop.permute.xlu0 %357 }
 0x10a   : > { %v1047_v24 = vpop.f32.mrb[16].mxu0 }
 0x10b   : > { %v1048_v25 = vadd.f32 %v1047_v24, %v995_v23  ;;  %1939 = vmatprep.subr.bf16.mxu1 %v876_v22  ;;  %v1949_v26 = vpop.f32.mrb[17].mxu0  ;;  %v436_v24 = vld [vmem:[%s2236_s13 + $0x10] sm:$0xff] }
 0x10c   : > { %1940 = vmatpush3.bf16.msra.mxu1 %v876_v22  ;;  %v1050_v29 = vpop.f32.mrb[18].mxu0  ;;  %v533_v17 = vpop.permute.xlu1 %532 }
 0x10d   : > { %v1051_v31 = vadd.f32 %v1050_v29, %v1000_v28  ;;  %v1950_v32 = vpop.f32.mrb[19].mxu0  ;;  %v1054_v33 = vmax.f32 %v1048_v25, 0.0  ;;  %v528_v16 = vpop.permute.xlu0 %527  ;;  %v434_v28 = vld [vmem:[%s2236_s13] sm:$0xff] }
 0x10f   : > { %v1055_v34 = vmax.f32 %v1051_v31, 0.0  ;;  %1942 = vmatmul.mubr.msk.bf16.vlgmr.msra.gmra.mrb[12].mxu1 %vm257_vm4, %v2039_v27 }
 0x110   : > { %1953 = vmatprep.mubr.msk.bf16.mxu1 %vm257_vm4, %v2040_v30  ;;  %v543_v19 = vpop.permute.xlu1 %542 }
 0x111   : > { %v1056_v35 = vpack.c.bf16 %v1055_v34, %v1054_v33  ;;  %v538_v18 = vpop.permute.xlu0 %537  ;;  %v437_v33 = vld [vmem:[%s2236_s13 + $0x18] sm:$0xff] }
 0x112   : > { %v1227_v37 = vpop.f32.mrb[20].mxu0 }
 0x113   : > { %v1228_v38 = vadd.f32 %v1227_v37, %v1175_v36  ;;  %1951 = vmatprep.subr.bf16.mxu1 %v1056_v35  ;;  %v1961_v39 = vpop.f32.mrb[21].mxu0  ;;  %v435_v37 = vld [vmem:[%s2236_s13 + $0x8] sm:$0xff] }
 0x114   : > { %1952 = vmatpush3.bf16.msra.mxu1 %v1056_v35  ;;  %v1230_v42 = vpop.f32.mrb[22].mxu0  ;;  %v713_v31 = vpop.permute.xlu1 %712 }
 0x115   : > { %v1231_v44 = vadd.f32 %v1230_v42, %v1180_v41  ;;  %v1962_v45 = vpop.f32.mrb[23].mxu0  ;;  %v1234_v46 = vmax.f32 %v1228_v38, 0.0  ;;  %v708_v23 = vpop.permute.xlu0 %707 }
 0x117   : > { %v1235_v47 = vmax.f32 %v1231_v44, 0.0  ;;  %1954 = vmatmul.mubr.msk.bf16.vlgmr.msra.gmra.mrb[16].mxu1 %vm257_vm4, %v2041_v40 }
 0x118   : > { %1965 = vmatprep.mubr.msk.bf16.mxu1 %vm257_vm4, %v2042_v43 }
 0x119   : > { %v1236_v48 = vpack.c.bf16 %v1235_v47, %v1234_v46  ;;  %v718_v41 = vpop.permute.xlu0 %717  ;;  %v723_v46 = vpop.permute.xlu1 %722 }
 0x11a   : > { %v1407_v50 = vpop.f32.mrb[24].mxu0 }
 0x11b   : > { %v1408_v51 = vadd.f32 %v1407_v50, %v1355_v49  ;;  %1963 = vmatprep.subr.bf16.mxu1 %v1236_v48  ;;  %v1973_v52 = vpop.f32.mrb[25].mxu0 }
 0x11c   : > { %1964 = vmatpush3.bf16.msra.mxu1 %v1236_v48  ;;  %v1410_v55 = vpop.f32.mrb[26].mxu0 }
 0x11d   : > { %v1411_v57 = vadd.f32 %v1410_v55, %v1360_v54  ;;  %v1974_v58 = vpop.f32.mrb[27].mxu0  ;;  %v1414_v59 = vmax.f32 %v1408_v51, 0.0 }
 0x11f   : > { %v1415_v60 = vmax.f32 %v1411_v57, 0.0  ;;  %1966 = vmatmul.mubr.msk.bf16.vlgmr.msra.gmra.mrb[20].mxu1 %vm257_vm4, %v2043_v53  ;;  %v888_v53 = vpop.permute.xlu0 %887 }
 0x120   : > { %1977 = vmatprep.mubr.msk.bf16.mxu1 %vm257_vm4, %v2044_v56 }
 0x121   : > { %v1416_v61 = vpack.c.bf16 %v1415_v60, %v1414_v59  ;;  %v893_v59 = vpop.permute.xlu1 %892 }
 0x122   : > { %v1587_v63 = vpop.f32.mrb[28].mxu0 }
 0x123   : > { %v1588_v0 = vadd.f32 %v1587_v63, %v1535_v62  ;;  %1975 = vmatprep.subr.bf16.mxu1 %v1416_v61  ;;  %v1985_v1 = vpop.f32.mrb[29].mxu0 }
 0x124   : > { %1976 = vmatpush3.bf16.msra.mxu1 %v1416_v61  ;;  %v1590_v4 = vpop.f32.mrb[30].mxu0 }
 0x125   : > { %v1591_v6 = vadd.f32 %v1590_v4, %v1540_v3  ;;  %v1986_v7 = vpop.f32.mrb[31].mxu0  ;;  %v1594_v8 = vmax.f32 %v1588_v0, 0.0 }
 0x126   : > { %v898_v7 = vpop.permute.xlu0 %897 }
 0x127   : > { %v1595_v9 = vmax.f32 %v1591_v6, 0.0  ;;  %1978 = vmatmul.mubr.msk.bf16.vlgmr.msra.gmra.mrb[24].mxu1 %vm257_vm4, %v2045_v2 }
 0x128   : > { %1989 = vmatprep.mubr.msk.bf16.mxu1 %vm257_vm4, %v2046_v5 }
 0x129   : > { %v1596_v10 = vpack.c.bf16 %v1595_v9, %v1594_v8 }
 0x12b   : > { %1987 = vmatprep.subr.bf16.mxu1 %v1596_v10 }
 0x12c   : > { %1988 = vmatpush3.bf16.msra.mxu1 %v1596_v10  ;;  %v903_v10 = vpop.permute.xlu1 %902 }
 0x12f   : > { %1990 = vmatmul.mubr.msk.bf16.vlgmr.msra.gmra.mrb[28].mxu1 %vm257_vm4, %v2047_v11 }
 0x1ca   : > { %v1907_v20 = vpop.f32.mrb[0].mxu1 }
 0x1cb   : > { %v424_v21 = vadd.f32 %v1907_v20, %v358_v14  ;;  %v415_v22 = vpop.f32.mrb[1].mxu1  ;;  %v1068_v20 = vpop.permute.xlu0 %1067 }
 0x1cc   : > { %v416_v25 = vadd.f32 %v415_v22, %v348_v12  ;;  %v1908_v26 = vpop.f32.mrb[2].mxu1 }
 0x1cd   : > { %v432_v27 = vmax.f32 %v424_v21, 0.0  ;;  %v427_v29 = vadd.f32 %v1908_v26, %v363_v15  ;;  %v418_v30 = vpop.f32.mrb[3].mxu1 }
 0x1ce   : > { %v430_v32 = vmax.f32 %v416_v25, 0.0  ;;  %v419_v34 = vadd.f32 %v418_v30, %v353_v13 }
 0x1cf   : > { %v440_v35 = vmax.f32 %v436_v24, %v432_v27  ;;  %v433_v36 = vmax.f32 %v427_v29, 0.0 }
 0x1d0   : > { %v438_v38 = vmax.f32 %v434_v28, %v430_v32  ;;  %v431_v39 = vmax.f32 %v419_v34, 0.0  ;;  %v1073_v28 = vpop.permute.xlu1 %1072 }
 0x1d1   : > { %444 = vst.msk [vmem:[%s2236_s13 + $0x10] sm:$0xff] %vm257_vm4, %v440_v35  ;;  %v441_v40 = vmax.f32 %v437_v33, %v433_v36  ;;  %v1078_v33 = vpop.permute.xlu0 %1077 }
 0x1d2   : > { %442 = vst.msk [vmem:[%s2236_s13] sm:$0xff] %vm257_vm4, %v438_v38  ;;  %v439_v42 = vmax.f32 %v435_v37, %v431_v39  ;;  %v1919_v43 = vpop.f32.mrb[4].mxu1 }
 0x1d3   : > { %445 = vst.msk [vmem:[%s2236_s13 + $0x18] sm:$0xff] %vm257_vm4, %v441_v40  ;;  %v604_v44 = vadd.f32 %v1919_v43, %v538_v18  ;;  %v595_v45 = vpop.f32.mrb[5].mxu1 }
 0x1d4   : > { %443 = vst.msk [vmem:[%s2236_s13 + $0x8] sm:$0xff] %vm257_vm4, %v439_v42  ;;  %v596_v47 = vadd.f32 %v595_v45, %v528_v16  ;;  %v1920_v48 = vpop.f32.mrb[6].mxu1  ;;  %v1083_v38 = vpop.permute.xlu1 %1082 }
 0x1d5   : > { %v607_v49 = vadd.f32 %v1920_v48, %v543_v19  ;;  %v598_v50 = vpop.f32.mrb[7].mxu1  ;;  %v612_v52 = vmax.f32 %v604_v44, 0.0 }
 0x1d6   : > { %v599_v51 = vadd.f32 %v598_v50, %v533_v17  ;;  %v610_v55 = vmax.f32 %v596_v47, 0.0 }
 0x1d7   : > { %v613_v58 = vmax.f32 %v607_v49, 0.0 }
 0x1d8   : > { %v616_v54 = vld [vmem:[%s2236_s13 + $0x10] sm:$0xff]  ;;  %v611_v62 = vmax.f32 %v599_v51, 0.0  ;;  %v1248_v51 = vpop.permute.xlu0 %1247 }
 0x1d9   : > { %v620_v56 = vmax.f32 %v616_v54, %v612_v52  ;;  %v614_v57 = vld [vmem:[%s2236_s13] sm:$0xff]  ;;  %v1253_v54 = vpop.permute.xlu1 %1252 }
 0x1da   : > { %v618_v60 = vmax.f32 %v614_v57, %v610_v55  ;;  %v617_v61 = vld [vmem:[%s2236_s13 + $0x18] sm:$0xff]  ;;  %v1931_v63 = vpop.f32.mrb[8].mxu1 }
 0x1db   : > { %624 = vst.msk [vmem:[%s2236_s13 + $0x10] sm:$0xff] %vm257_vm4, %v620_v56  ;;  %v621_v0 = vmax.f32 %v617_v61, %v613_v58  ;;  %v615_v1 = vld [vmem:[%s2236_s13 + $0x8] sm:$0xff]  ;;  %v775_v2 = vpop.f32.mrb[9].mxu1  ;;  %v784_v5 = vadd.f32 %v1931_v63, %v718_v41 }
 0x1dc   : > { %622 = vst.msk [vmem:[%s2236_s13] sm:$0xff] %vm257_vm4, %v618_v60  ;;  %v619_v3 = vmax.f32 %v615_v1, %v611_v62  ;;  %v1932_v4 = vpop.f32.mrb[10].mxu1  ;;  %v776_v8 = vadd.f32 %v775_v2, %v708_v23  ;;  %v1258_v63 = vpop.permute.xlu0 %1257 }
 0x1dd   : > { %625 = vst.msk [vmem:[%s2236_s13 + $0x18] sm:$0xff] %vm257_vm4, %v621_v0  ;;  %v778_v6 = vpop.f32.mrb[11].mxu1  ;;  %v787_v9 = vadd.f32 %v1932_v4, %v723_v46  ;;  %v792_v12 = vmax.f32 %v784_v5, 0.0  ;;  %v1263_v5 = vpop.permute.xlu1 %1262 }
 0x1de   : > { %623 = vst.msk [vmem:[%s2236_s13 + $0x8] sm:$0xff] %vm257_vm4, %v619_v3  ;;  %v779_v11 = vadd.f32 %v778_v6, %v713_v31  ;;  %v790_v14 = vmax.f32 %v776_v8, 0.0 }
 0x1df   : > { %v793_v18 = vmax.f32 %v787_v9, 0.0 }
 0x1e0   : > { %v791_v23 = vmax.f32 %v779_v11, 0.0 }
 0x1e2   : > { %v796_v13 = vld [vmem:[%s2236_s13 + $0x10] sm:$0xff]  ;;  %v1943_v15 = vpop.f32.mrb[12].mxu1 }
 0x1e3   : > { %v800_v16 = vmax.f32 %v796_v13, %v792_v12  ;;  %v794_v17 = vld [vmem:[%s2236_s13] sm:$0xff]  ;;  %v955_v19 = vpop.f32.mrb[13].mxu1  ;;  %v964_v30 = vadd.f32 %v1943_v15, %v898_v7  ;;  %v1428_v15 = vpop.permute.xlu0 %1427 }
 0x1e4   : > { %v798_v21 = vmax.f32 %v794_v17, %v790_v14  ;;  %v797_v22 = vld [vmem:[%s2236_s13 + $0x18] sm:$0xff]  ;;  %v1944_v24 = vpop.f32.mrb[14].mxu1  ;;  %v956_v31 = vadd.f32 %v955_v19, %v888_v53 }
 0x1e5   : > { %804 = vst.msk [vmem:[%s2236_s13 + $0x10] sm:$0xff] %vm257_vm4, %v800_v16  ;;  %v801_v25 = vmax.f32 %v797_v22, %v793_v18  ;;  %v795_v26 = vld [vmem:[%s2236_s13 + $0x8] sm:$0xff]  ;;  %v958_v27 = vpop.f32.mrb[15].mxu1  ;;  %v967_v32 = vadd.f32 %v1944_v24, %v903_v10  ;;  %v972_v36 = vmax.f32 %v964_v30, 0.0 }
 0x1e6   : > { %802 = vst.msk [vmem:[%s2236_s13] sm:$0xff] %vm257_vm4, %v798_v21  ;;  %v799_v29 = vmax.f32 %v795_v26, %v791_v23  ;;  %v959_v34 = vadd.f32 %v958_v27, %v893_v59  ;;  %v970_v40 = vmax.f32 %v956_v31, 0.0 }
 0x1e7   : > { %805 = vst.msk [vmem:[%s2236_s13 + $0x18] sm:$0xff] %vm257_vm4, %v801_v25  ;;  %v973_v44 = vmax.f32 %v967_v32, 0.0 }
 0x1e8   : > { %803 = vst.msk [vmem:[%s2236_s13 + $0x8] sm:$0xff] %vm257_vm4, %v799_v29  ;;  %v971_v48 = vmax.f32 %v959_v34, 0.0 }
 0x1ea   : > { %v1955_v35 = vpop.f32.mrb[16].mxu1 }
 0x1eb   : > { %v1135_v37 = vpop.f32.mrb[17].mxu1  ;;  %v1144_v53 = vadd.f32 %v1955_v35, %v1078_v33 }
 0x1ec   : > { %v976_v39 = vld [vmem:[%s2236_s13 + $0x10] sm:$0xff]  ;;  %v1956_v41 = vpop.f32.mrb[18].mxu1  ;;  %v1136_v55 = vadd.f32 %v1135_v37, %v1068_v20  ;;  %v1433_v20 = vpop.permute.xlu1 %1432 }
 0x1ed   : > { %v980_v42 = vmax.f32 %v976_v39, %v972_v36  ;;  %v974_v43 = vld [vmem:[%s2236_s13] sm:$0xff]  ;;  %v1138_v45 = vpop.f32.mrb[19].mxu1  ;;  %v1147_v57 = vadd.f32 %v1956_v41, %v1083_v38  ;;  %v1152_v61 = vmax.f32 %v1144_v53, 0.0 }
 0x1ee   : > { %v978_v46 = vmax.f32 %v974_v43, %v970_v40  ;;  %v977_v47 = vld [vmem:[%s2236_s13 + $0x18] sm:$0xff]  ;;  %v1139_v59 = vadd.f32 %v1138_v45, %v1073_v28  ;;  %v1150_v1 = vmax.f32 %v1136_v55, 0.0  ;;  %v1438_v28 = vpop.permute.xlu0 %1437 }
 0x1ef   : > { %984 = vst.msk [vmem:[%s2236_s13 + $0x10] sm:$0xff] %vm257_vm4, %v980_v42  ;;  %v981_v49 = vmax.f32 %v977_v47, %v973_v44  ;;  %v975_v50 = vld [vmem:[%s2236_s13 + $0x8] sm:$0xff]  ;;  %v1153_v4 = vmax.f32 %v1147_v57, 0.0 }
 0x1f0   : > { %982 = vst.msk [vmem:[%s2236_s13] sm:$0xff] %vm257_vm4, %v978_v46  ;;  %v979_v52 = vmax.f32 %v975_v50, %v971_v48  ;;  %v1151_v8 = vmax.f32 %v1139_v59, 0.0  ;;  %v1443_v36 = vpop.permute.xlu1 %1442 }
 0x1f1   : > { %985 = vst.msk [vmem:[%s2236_s13 + $0x18] sm:$0xff] %vm257_vm4, %v981_v49 }
 0x1f2   : > { %983 = vst.msk [vmem:[%s2236_s13 + $0x8] sm:$0xff] %vm257_vm4, %v979_v52  ;;  %v1967_v56 = vpop.f32.mrb[20].mxu1  ;;  %v1608_v43 = vpop.permute.xlu0 %1607 }
 0x1f3   : > { %v1315_v58 = vpop.f32.mrb[21].mxu1  ;;  %v1324_v13 = vadd.f32 %v1967_v56, %v1258_v63 }
 0x1f4   : > { %v1968_v60 = vpop.f32.mrb[22].mxu1  ;;  %v1316_v16 = vadd.f32 %v1315_v58, %v1248_v51  ;;  %v1613_v46 = vpop.permute.xlu1 %1612 }
 0x1f5   : > { %v1318_v62 = vpop.f32.mrb[23].mxu1  ;;  %v1327_v18 = vadd.f32 %v1968_v60, %v1263_v5  ;;  %v1332_v22 = vmax.f32 %v1324_v13, 0.0 }
 0x1f6   : > { %v1156_v0 = vld [vmem:[%s2236_s13 + $0x10] sm:$0xff]  ;;  %v1319_v21 = vadd.f32 %v1318_v62, %v1253_v54  ;;  %v1330_v24 = vmax.f32 %v1316_v16, 0.0  ;;  %v1618_v57 = vpop.permute.xlu0 %1617 }
 0x1f7   : > { %v1160_v2 = vmax.f32 %v1156_v0, %v1152_v61  ;;  %v1154_v3 = vld [vmem:[%s2236_s13] sm:$0xff]  ;;  %v1333_v27 = vmax.f32 %v1327_v18, 0.0 }
 0x1f8   : > { %v1158_v6 = vmax.f32 %v1154_v3, %v1150_v1  ;;  %v1157_v7 = vld [vmem:[%s2236_s13 + $0x18] sm:$0xff]  ;;  %v1331_v31 = vmax.f32 %v1319_v21, 0.0  ;;  %v1623_v60 = vpop.permute.xlu1 %1622 }
 0x1f9   : > { %1164 = vst.msk [vmem:[%s2236_s13 + $0x10] sm:$0xff] %vm257_vm4, %v1160_v2  ;;  %v1161_v9 = vmax.f32 %v1157_v7, %v1153_v4  ;;  %v1155_v10 = vld [vmem:[%s2236_s13 + $0x8] sm:$0xff] }
 0x1fa   : > { %1162 = vst.msk [vmem:[%s2236_s13] sm:$0xff] %vm257_vm4, %v1158_v6  ;;  %v1159_v11 = vmax.f32 %v1155_v10, %v1151_v8  ;;  %v1979_v12 = vpop.f32.mrb[24].mxu1 }
 0x1fb   : > { %1165 = vst.msk [vmem:[%s2236_s13 + $0x18] sm:$0xff] %vm257_vm4, %v1161_v9  ;;  %v1495_v14 = vpop.f32.mrb[25].mxu1  ;;  %v1504_v39 = vadd.f32 %v1979_v12, %v1438_v28 }
 0x1fc   : > { %1163 = vst.msk [vmem:[%s2236_s13 + $0x8] sm:$0xff] %vm257_vm4, %v1159_v11  ;;  %v1980_v17 = vpop.f32.mrb[26].mxu1  ;;  %v1496_v41 = vadd.f32 %v1495_v14, %v1428_v15 }
 0x1fd   : > { %v1498_v19 = vpop.f32.mrb[27].mxu1  ;;  %v1507_v42 = vadd.f32 %v1980_v17, %v1443_v36  ;;  %v1512_v45 = vmax.f32 %v1504_v39, 0.0 }
 0x1fe   : > { %v1499_v44 = vadd.f32 %v1498_v19, %v1433_v20  ;;  %v1510_v48 = vmax.f32 %v1496_v41, 0.0 }
 0x1ff   : > { %v1513_v51 = vmax.f32 %v1507_v42, 0.0 }
 0x200   : > { %v1336_v23 = vld [vmem:[%s2236_s13 + $0x10] sm:$0xff]  ;;  %v1511_v54 = vmax.f32 %v1499_v44, 0.0 }
 0x201   : > { %v1340_v25 = vmax.f32 %v1336_v23, %v1332_v22  ;;  %v1334_v26 = vld [vmem:[%s2236_s13] sm:$0xff] }
 0x202   : > { %v1338_v29 = vmax.f32 %v1334_v26, %v1330_v24  ;;  %v1337_v30 = vld [vmem:[%s2236_s13 + $0x18] sm:$0xff]  ;;  %v1991_v32 = vpop.f32.mrb[28].mxu1 }
 0x203   : > { %1344 = vst.msk [vmem:[%s2236_s13 + $0x10] sm:$0xff] %vm257_vm4, %v1340_v25  ;;  %v1341_v33 = vmax.f32 %v1337_v30, %v1333_v27  ;;  %v1335_v34 = vld [vmem:[%s2236_s13 + $0x8] sm:$0xff]  ;;  %v1675_v35 = vpop.f32.mrb[29].mxu1  ;;  %v1684_v59 = vadd.f32 %v1991_v32, %v1618_v57 }
 0x204   : > { %1342 = vst.msk [vmem:[%s2236_s13] sm:$0xff] %vm257_vm4, %v1338_v29  ;;  %v1339_v37 = vmax.f32 %v1335_v34, %v1331_v31  ;;  %v1992_v38 = vpop.f32.mrb[30].mxu1  ;;  %v1676_v61 = vadd.f32 %v1675_v35, %v1608_v43 }
 0x205   : > { %1345 = vst.msk [vmem:[%s2236_s13 + $0x18] sm:$0xff] %vm257_vm4, %v1341_v33  ;;  %v1678_v40 = vpop.f32.mrb[31].mxu1  ;;  %v1687_v62 = vadd.f32 %v1992_v38, %v1623_v60  ;;  %v1692_v0 = vmax.f32 %v1684_v59, 0.0 }
 0x206   : > { %1343 = vst.msk [vmem:[%s2236_s13 + $0x8] sm:$0xff] %vm257_vm4, %v1339_v37  ;;  %v1679_v63 = vadd.f32 %v1678_v40, %v1613_v46  ;;  %v1690_v2 = vmax.f32 %v1676_v61, 0.0 }
 0x207   : > { %v1693_v5 = vmax.f32 %v1687_v62, 0.0 }
 0x208   : > { %v1691_v8 = vmax.f32 %v1679_v63, 0.0 }
 0x20a   : > { %v1516_v47 = vld [vmem:[%s2236_s13 + $0x10] sm:$0xff] }
 0x20b   : > { %v1520_v49 = vmax.f32 %v1516_v47, %v1512_v45  ;;  %v1514_v50 = vld [vmem:[%s2236_s13] sm:$0xff] }
 0x20c   : > { %v1518_v52 = vmax.f32 %v1514_v50, %v1510_v48  ;;  %v1517_v53 = vld [vmem:[%s2236_s13 + $0x18] sm:$0xff] }
 0x20d   : > { %1524 = vst.msk [vmem:[%s2236_s13 + $0x10] sm:$0xff] %vm257_vm4, %v1520_v49  ;;  %v1521_v55 = vmax.f32 %v1517_v53, %v1513_v51  ;;  %v1515_v56 = vld [vmem:[%s2236_s13 + $0x8] sm:$0xff] }
 0x20e   : > { %1522 = vst.msk [vmem:[%s2236_s13] sm:$0xff] %vm257_vm4, %v1518_v52  ;;  %v1519_v58 = vmax.f32 %v1515_v56, %v1511_v54 }
 0x20f   : > { %1525 = vst.msk [vmem:[%s2236_s13 + $0x18] sm:$0xff] %vm257_vm4, %v1521_v55 }
 0x210   : > { %1523 = vst.msk [vmem:[%s2236_s13 + $0x8] sm:$0xff] %vm257_vm4, %v1519_v58 }
 0x214   : > { %v1696_v1 = vld [vmem:[%s2236_s13 + $0x10] sm:$0xff] }
 0x215   : > { %v1700_v3 = vmax.f32 %v1696_v1, %v1692_v0  ;;  %v1694_v4 = vld [vmem:[%s2236_s13] sm:$0xff] }
 0x216   : > { %v1698_v6 = vmax.f32 %v1694_v4, %v1690_v2  ;;  %v1697_v7 = vld [vmem:[%s2236_s13 + $0x18] sm:$0xff] }
 0x217   : > { %1704 = vst.msk [vmem:[%s2236_s13 + $0x10] sm:$0xff] %vm257_vm4, %v1700_v3  ;;  %v1701_v9 = vmax.f32 %v1697_v7, %v1693_v5  ;;  %v1695_v10 = vld [vmem:[%s2236_s13 + $0x8] sm:$0xff] }
 0x218   : > { %1702 = vst.msk [vmem:[%s2236_s13] sm:$0xff] %vm257_vm4, %v1698_v6  ;;  %v1699_v11 = vmax.f32 %v1695_v10, %v1691_v8 }
 0x219   : > { %1705 = vst.msk [vmem:[%s2236_s13 + $0x18] sm:$0xff] %vm257_vm4, %v1701_v9 }
 0x21a   : > { %1703 = vst.msk [vmem:[%s2236_s13 + $0x8] sm:$0xff] %vm257_vm4, %v1699_v11 }
 0x21b PF: > { %s15_s20 = sadd.s32 1, %s2070_s20   ;;  %s2417_s18 = smov %s2066_s19 }
 0x21c   : > { %p12_p5 = scmp.ge.s32.totalorder %s15_s20, 4   ;;  %s2418_s19 = smov %s2420_s21 }
 0x21e   :  { %14 = sbr.rel (!%p12_p5) target bundleno = 2 (0x2), region = 77 }

</bundles_post_ra>
